<compile_context>
chip_gen: v5e
topology: v5e:2x2
jax: 0.10.0
libtpu: 0.0.40
codegen_flags: <defaults>
</compile_context>

<pallas_src>
import functools
import numpy as np
import jax
import jax.numpy as jnp
from jax.experimental import pallas as pl
from jax.experimental.pallas import tpu as pltpu  # noqa: F401  (TPU backend)

# ----------------------------------------------------------------------------
# Synthetic config (mirrors the shapes implied by the PyTorch module __init__).
# ----------------------------------------------------------------------------
config = {
    "BVAE_latent": 8,
    "BVAE_hidden": 32,
    "input_channels": 3,
    "conv1": (8, 3),              # (out_channels, kernel) of encoder conv1
    "conv2": (16, 3),
    "conv3": (32, 3),
    "output_conv1": (8, 16, 16),  # (C, H, W)
    "output_conv2": (16, 8, 8),
    "output_conv3": (32, 4, 4),
    "image_size": (3, 32, 32),
}


# ----------------------------------------------------------------------------
# Constant-matrix builders (glue / parameter setup, numpy).
# ----------------------------------------------------------------------------
def make_bilinear_matrix(out_size, in_size):
    """1-D bilinear interpolation matrix, PyTorch align_corners=False semantics."""
    scale = in_size / out_size
    dst = np.arange(out_size, dtype=np.float64)
    src = (dst + 0.5) * scale - 0.5
    src = np.maximum(src, 0.0)
    i0 = np.minimum(np.floor(src).astype(np.int64), in_size - 1)
    i1 = np.minimum(i0 + 1, in_size - 1)
    frac = src - i0
    W = np.zeros((out_size, in_size), dtype=np.float32)
    W[np.arange(out_size), i0] += (1.0 - frac).astype(np.float32)
    W[np.arange(out_size), i1] += frac.astype(np.float32)
    return W


def shifted_mats(Wmat, K):
    """mats[k, o, :] = Wmat[o + k - pad, :] (zero rows where shifted index is OOB).

    The zero rows emulate zero padding of the *upsampled* map, matching
    F.interpolate(..., mode='bilinear') followed by Conv2d(padding='same',
    padding_mode='zeros').
    """
    pad = (K - 1) // 2
    Out, In = Wmat.shape
    mats = np.zeros((K, Out, In), dtype=np.float32)
    for k in range(K):
        for o in range(Out):
            s = o + k - pad
            if 0 <= s < Out:
                mats[k, o, :] = Wmat[s, :]
    return mats


def make_stage_params(key, Hin, Win, Cin, Hout, Wout, Cout, K, B, cout_pad=None):
    """Constants for one (bilinear upsample -> conv 'same') stage, batch folded.

    Returns:
      whb      (K, B*Hout, B*Hin)  bf16  kron(I_B, shifted H-upsample), rows (b, h)
      comb_cat (Win*Cin, K*Wout*Cpad) bf16  kw-folded (W-upsample o channel-mix),
                                            concatenated along N per kh
      bias     (1, Wout*Cpad)      f32
    """
    cout_pad = Cout if cout_pad is None else cout_pad
    kw_key, kb_key = jax.random.split(key)
    conv_w = np.asarray(0.1 * jax.random.normal(kw_key, (K, K, Cin, Cout), jnp.float32))
    conv_b = np.asarray(0.1 * jax.random.normal(kb_key, (Cout,), jnp.float32))
    if cout_pad > Cout:   # zero-pad output channels -> lane-dense (multiple of 128)
        conv_w = np.concatenate(
            [conv_w, np.zeros((K, K, Cin, cout_pad - Cout), np.float32)], axis=-1)
        conv_b = np.concatenate([conv_b, np.zeros((cout_pad - Cout,), np.float32)])

    wh_s = shifted_mats(make_bilinear_matrix(Hout, Hin), K)   # (K, Hout, Hin)
    ww_s = shifted_mats(make_bilinear_matrix(Wout, Win), K)   # (K, Wout, Win)

    # Batch-folded H-upsample with rows ordered (b, h): whb[k] = kron(I_B, wh_s[k]).
    eye_b = np.eye(B, dtype=np.float32)
    whb = np.einsum("koh,bc->kboch", wh_s, eye_b).reshape(K, B * Hout, B * Hin)

    # kw-folded combined matrix (exact by linearity; t := whb[kh] @ x is kw-independent):
    #   combsum[kh, wi*Cin+ci, wo*Cpad+co] = sum_kw ww_s[kw, wo, wi] * conv_w[kh, kw, ci, co]
    combsum = np.einsum("xwi,hxcd->hicwd", ww_s, conv_w).reshape(
        K, Win * Cin, Wout * cout_pad)
    # Concatenate the K folded matrices along N -> one wide MXU operand.
    comb_cat = np.transpose(combsum, (1, 0, 2)).reshape(Win * Cin, K * Wout * cout_pad)

    bias = np.tile(conv_b, Wout).reshape(1, Wout * cout_pad)

    return (jnp.asarray(whb, dtype=jnp.bfloat16),       # exact in bf16 (0/.25/.5/.75)
            jnp.asarray(comb_cat, dtype=jnp.bfloat16),  # big weights -> bf16
            jnp.asarray(bias, dtype=jnp.float32))


# ----------------------------------------------------------------------------
# Single fused Pallas kernel: fc1 -> fc2 -> 3 x (upsample -> conv -> act).
# ----------------------------------------------------------------------------
def decoder_kernel(lat_ref, w1_ref, b1_ref, w2_ref, b2_ref, place_ref,
                   wh1_ref, cb1_ref, bs1_ref,
                   wh2_ref, cb2_ref, bs2_ref,
                   wh3_ref, cb3_ref, bs3_ref,
                   o_ref, *, H3, L0):
    f32, bf16 = jnp.float32, jnp.bfloat16

    def leaky(v):                                      # F.leaky_relu, slope 0.01
        return jnp.where(v > 0, v, 0.01 * v)

    # ---- fc1 + leaky_relu ----
    h = jnp.dot(lat_ref[...], w1_ref[...], preferred_element_type=f32) + b1_ref[...]
    h = leaky(h)                                       # (B, hidden)

    # ---- fc2 + leaky_relu (bf16 weight, f32 accumulate) ----
    h = jnp.dot(h.astype(bf16), w2_ref[...], preferred_element_type=f32) + b2_ref[...]
    h = leaky(h).astype(bf16)                          # (B, H3*L0), columns (h, w, c)

    # ---- assemble stage-0 activation x: (B*H3, L0), rows ordered (b, h) ----
    # tiny bf16 placement matmuls (no in-kernel reshapes / relayouts), init from
    # the first product (no zeros init).  Slices are at multiples of 128 lanes.
    x = jnp.dot(place_ref[0], h[:, 0:L0], preferred_element_type=f32)
    for hr in range(1, H3):
        x = x + jnp.dot(place_ref[hr], h[:, hr * L0:(hr + 1) * L0],
                        preferred_element_type=f32)

    # ---- one (upsample -> conv 'same' -> activation) stage: 1 wide + K tiny matmuls ----
    def stage(x_in, wh_ref, cb_ref, bs_ref, *, sigmoid):
        K = wh_ref.shape[0]                            # 3
        N = cb_ref.shape[1] // K                       # Wout * Cout(_pad) = 128
        x_bf = x_in.astype(bf16)                       # cast once per stage
        # kw-folded, N-concatenated conv weights: one (M=B*Hin, 128) @ (128, K*128)
        u = jnp.dot(x_bf, cb_ref[...], preferred_element_type=f32).astype(bf16)
        # shifted bilinear H-upsample (block-diag kron(I_B, Wh)) on 128-lane slices
        acc = jnp.dot(wh_ref[0], u[:, 0:N], preferred_element_type=f32)
        for kh in range(1, K):
            acc = acc + jnp.dot(wh_ref[kh], u[:, kh * N:(kh + 1) * N],
                                preferred_element_type=f32)
        y = acc + bs_ref[...]
        if sigmoid:
            return 1.0 / (1.0 + jnp.exp(-y))           # exact sigmoid, stays in [0,1]
        return leaky(y)

    x = stage(x, wh1_ref, cb1_ref, bs1_ref, sigmoid=False)   # -> (B*8,  8*16=128)
    x = stage(x, wh2_ref, cb2_ref, bs2_ref, sigmoid=False)   # -> (B*16, 16*8=128)
    o_ref[...] = stage(x, wh3_ref, cb3_ref, bs3_ref, sigmoid=True)  # (B*32, 32*4=128)


# ----------------------------------------------------------------------------
# Parameter construction + forward wrapper.
# ----------------------------------------------------------------------------
def build_decoder_params(key, B):
    latent = config["BVAE_latent"]
    hidden = config["BVAE_hidden"]
    C3, H3, W3 = config["output_conv3"]
    C2, H2, W2s = config["output_conv2"]
    C1, H1, W1s = config["output_conv1"]
    Cimg, Himg, Wimg = config["image_size"]
    k = jax.random.split(key, 7)

    W1 = np.asarray(0.2 * jax.random.normal(k[0], (latent, hidden), jnp.float32))
    b1 = np.asarray(0.1 * jax.random.normal(k[1], (hidden,), jnp.float32))
    W2 = np.asarray(0.05 * jax.random.normal(k[2], (hidden, C3 * H3 * W3), jnp.float32))
    b2 = np.asarray(0.05 * jax.random.normal(k[3], (C3 * H3 * W3,), jnp.float32))

    # PyTorch reshapes fc2 output as (C, H, W); permute fc2 columns so the kernel
    # directly produces the (h-major, (w, c)-interleaved) layout.
    perm = np.array([c * H3 * W3 + h * W3 + w
                     for h in range(H3) for w in range(W3) for c in range(C3)],
                    dtype=np.int64)
    W2p, b2p = W2[:, perm], b2[perm]

    # Placement matrices for rows ordered (b, h): row b*H3 + hr <- fc2 group hr of batch b.
    place = np.zeros((H3, B * H3, B), np.float32)
    for hr in range(H3):
        for b in range(B):
            place[hr, b * H3 + hr, b] = 1.0

    stage1 = make_stage_params(k[4], H3, W3, C3, H2, W2s,
                               config["conv2"][0], config["conv3"][1], B)
    stage2 = make_stage_params(k[5], H2, W2s, C2, H1, W1s,
                               config["conv1"][0], config["conv2"][1], B)
    stage3 = make_stage_params(k[6], H1, W1s, C1, Himg, Wimg,
                               config["input_channels"], config["conv1"][1], B,
                               cout_pad=4)                     # pad 3 -> 4 (lane dense)

    return (jnp.asarray(W1, jnp.float32),
            jnp.asarray(b1.reshape(1, hidden), jnp.float32),
            jnp.asarray(W2p, jnp.bfloat16),
            jnp.asarray(b2p.reshape(1, C3 * H3 * W3), jnp.float32),
            jnp.asarray(place, jnp.bfloat16),
            stage1, stage2, stage3)


def decoder_forward(lat, params):
    w1, b1, w2, b2, place, s1, s2, s3 = params
    B = lat.shape[0]
    C3, H3, W3 = config["output_conv3"]
    Cimg, Himg, Wimg = config["image_size"]
    Cpad = s3[2].shape[1] // Wimg                      # padded output channels (=4)

    kern = functools.partial(decoder_kernel, H3=H3, L0=W3 * C3)
    out_flat = pl.pallas_call(
        kern,
        out_shape=jax.ShapeDtypeStruct((B * Himg, Wimg * Cpad), jnp.float32),
    )(lat, w1, b1, w2, b2, place, *s1, *s2, *s3)

    # rows are (b, h)-ordered, lanes are (w, c)-interleaved (c padded to Cpad):
    # drop the pad channel and go back to PyTorch NCHW.
    out = out_flat.reshape(B, Himg, Wimg, Cpad)[..., :Cimg].transpose(0, 3, 1, 2)
    return out


# ----------------------------------------------------------------------------
if __name__ == "__main__":
    key = jax.random.PRNGKey(0)
    k_lat, k_par = jax.random.split(key)

    B = 2
    lat = jax.random.normal(k_lat, (B, config["BVAE_latent"]), jnp.float32)
    params = build_decoder_params(k_par, B)

    out = decoder_forward(lat, params)
    out = jax.block_until_ready(out)

    Cimg, Himg, Wimg = config["image_size"]
    assert out.shape == (B, Cimg, Himg, Wimg), out.shape
    assert out.dtype == jnp.float32
    assert bool(jnp.all(jnp.isfinite(out)))
    assert bool(jnp.all(out >= 0.0)) and bool(jnp.all(out <= 1.0))

    print("KERNEL_OK")
</pallas_src>

<mosaic_0001>
module attributes {stable_mosaic.version = 11 : i64} {
  func.func @decoder_kernel(%arg0: memref<2x8xf32, #tpu.memory_space<vmem>>, %arg1: memref<8x32xf32, #tpu.memory_space<vmem>>, %arg2: memref<1x32xf32, #tpu.memory_space<vmem>>, %arg3: memref<32x512xbf16, #tpu.memory_space<vmem>>, %arg4: memref<1x512xf32, #tpu.memory_space<vmem>>, %arg5: memref<4x8x2xbf16, #tpu.memory_space<vmem>>, %arg6: memref<3x16x8xbf16, #tpu.memory_space<vmem>>, %arg7: memref<128x384xbf16, #tpu.memory_space<vmem>>, %arg8: memref<1x128xf32, #tpu.memory_space<vmem>>, %arg9: memref<3x32x16xbf16, #tpu.memory_space<vmem>>, %arg10: memref<128x384xbf16, #tpu.memory_space<vmem>>, %arg11: memref<1x128xf32, #tpu.memory_space<vmem>>, %arg12: memref<3x64x32xbf16, #tpu.memory_space<vmem>>, %arg13: memref<128x384xbf16, #tpu.memory_space<vmem>>, %arg14: memref<1x128xf32, #tpu.memory_space<vmem>>, %arg15: memref<64x128xf32, #tpu.memory_space<vmem>>) attributes {dimension_semantics = [], scalar_prefetch = 0 : i64, scratch_operands = 0 : i64, tpu.core_type = #tpu.core_type<tc>} {
    %c0 = arith.constant 0 : index
    %c0_0 = arith.constant 0 : index
    %0 = vector.load %arg0[%c0, %c0_0] : memref<2x8xf32, #tpu.memory_space<vmem>>, vector<2x8xf32>
    %c0_1 = arith.constant 0 : index
    %c0_2 = arith.constant 0 : index
    %1 = vector.load %arg1[%c0_1, %c0_2] : memref<8x32xf32, #tpu.memory_space<vmem>>, vector<8x32xf32>
    %cst = arith.constant dense<0.000000e+00> : vector<2x32xf32>
    %2 = tpu.matmul %0, %1, %cst {dimension_numbers = #tpu.dot_dimension_numbers<[1], [0], [0], [1], [0, 0, 1, 1], [], []>} : vector<2x8xf32>, vector<8x32xf32>, vector<2x32xf32> -> vector<2x32xf32>
    %c0_3 = arith.constant 0 : index
    %c0_4 = arith.constant 0 : index
    %3 = vector.load %arg2[%c0_3, %c0_4] : memref<1x32xf32, #tpu.memory_space<vmem>>, vector<1x32xf32>
    %4 = vector.broadcast %3 : vector<1x32xf32> to vector<2x32xf32>
    %5 = arith.addf %2, %4 : vector<2x32xf32>
    %cst_5 = arith.constant 0.000000e+00 : f32
    %6 = vector.broadcast %cst_5 : f32 to vector<2x32xf32>
    %7 = arith.cmpf ogt, %5, %6 : vector<2x32xf32>
    %cst_6 = arith.constant 0.00999999977 : f32
    %8 = vector.broadcast %cst_6 : f32 to vector<2x32xf32>
    %9 = arith.mulf %8, %5 : vector<2x32xf32>
    %10 = arith.select %7, %5, %9 : vector<2x32xi1>, vector<2x32xf32>
    %11 = arith.truncf %10 : vector<2x32xf32> to vector<2x32xbf16>
    %c0_7 = arith.constant 0 : index
    %c0_8 = arith.constant 0 : index
    %12 = vector.load %arg3[%c0_7, %c0_8] : memref<32x512xbf16, #tpu.memory_space<vmem>>, vector<32x512xbf16>
    %cst_9 = arith.constant dense<0.000000e+00> : vector<2x512xf32>
    %13 = tpu.matmul %11, %12, %cst_9 {dimension_numbers = #tpu.dot_dimension_numbers<[1], [0], [0], [1], [0, 0, 1, 1], [], []>} : vector<2x32xbf16>, vector<32x512xbf16>, vector<2x512xf32> -> vector<2x512xf32>
    %c0_10 = arith.constant 0 : index
    %c0_11 = arith.constant 0 : index
    %14 = vector.load %arg4[%c0_10, %c0_11] : memref<1x512xf32, #tpu.memory_space<vmem>>, vector<1x512xf32>
    %15 = vector.broadcast %14 : vector<1x512xf32> to vector<2x512xf32>
    %16 = arith.addf %13, %15 : vector<2x512xf32>
    %cst_12 = arith.constant 0.000000e+00 : f32
    %17 = vector.broadcast %cst_12 : f32 to vector<2x512xf32>
    %18 = arith.cmpf ogt, %16, %17 : vector<2x512xf32>
    %cst_13 = arith.constant 0.00999999977 : f32
    %19 = vector.broadcast %cst_13 : f32 to vector<2x512xf32>
    %20 = arith.mulf %19, %16 : vector<2x512xf32>
    %21 = arith.select %18, %16, %20 : vector<2x512xi1>, vector<2x512xf32>
    %22 = arith.truncf %21 : vector<2x512xf32> to vector<2x512xbf16>
    %c0_14 = arith.constant 0 : index
    %c0_15 = arith.constant 0 : index
    %c0_16 = arith.constant 0 : index
    %23 = vector.load %arg5[%c0_14, %c0_15, %c0_16] : memref<4x8x2xbf16, #tpu.memory_space<vmem>>, vector<1x8x2xbf16>
    %24 = vector.shape_cast %23 : vector<1x8x2xbf16> to vector<8x2xbf16>
    %25 = vector.extract_strided_slice %22 {offsets = [0, 0], sizes = [2, 128], strides = [1, 1]} : vector<2x512xbf16> to vector<2x128xbf16>
    %cst_17 = arith.constant dense<0.000000e+00> : vector<8x128xf32>
    %26 = tpu.matmul %24, %25, %cst_17 {dimension_numbers = #tpu.dot_dimension_numbers<[1], [0], [0], [1], [0, 0, 1, 1], [], []>} : vector<8x2xbf16>, vector<2x128xbf16>, vector<8x128xf32> -> vector<8x128xf32>
    %c1 = arith.constant 1 : index
    %c0_18 = arith.constant 0 : index
    %c0_19 = arith.constant 0 : index
    %27 = vector.load %arg5[%c1, %c0_18, %c0_19] : memref<4x8x2xbf16, #tpu.memory_space<vmem>>, vector<1x8x2xbf16>
    %28 = vector.shape_cast %27 : vector<1x8x2xbf16> to vector<8x2xbf16>
    %29 = vector.extract_strided_slice %22 {offsets = [0, 128], sizes = [2, 128], strides = [1, 1]} : vector<2x512xbf16> to vector<2x128xbf16>
    %cst_20 = arith.constant dense<0.000000e+00> : vector<8x128xf32>
    %30 = tpu.matmul %28, %29, %cst_20 {dimension_numbers = #tpu.dot_dimension_numbers<[1], [0], [0], [1], [0, 0, 1, 1], [], []>} : vector<8x2xbf16>, vector<2x128xbf16>, vector<8x128xf32> -> vector<8x128xf32>
    %31 = arith.addf %26, %30 : vector<8x128xf32>
    %c2 = arith.constant 2 : index
    %c0_21 = arith.constant 0 : index
    %c0_22 = arith.constant 0 : index
    %32 = vector.load %arg5[%c2, %c0_21, %c0_22] : memref<4x8x2xbf16, #tpu.memory_space<vmem>>, vector<1x8x2xbf16>
    %33 = vector.shape_cast %32 : vector<1x8x2xbf16> to vector<8x2xbf16>
    %34 = vector.extract_strided_slice %22 {offsets = [0, 256], sizes = [2, 128], strides = [1, 1]} : vector<2x512xbf16> to vector<2x128xbf16>
    %cst_23 = arith.constant dense<0.000000e+00> : vector<8x128xf32>
    %35 = tpu.matmul %33, %34, %cst_23 {dimension_numbers = #tpu.dot_dimension_numbers<[1], [0], [0], [1], [0, 0, 1, 1], [], []>} : vector<8x2xbf16>, vector<2x128xbf16>, vector<8x128xf32> -> vector<8x128xf32>
    %36 = arith.addf %31, %35 : vector<8x128xf32>
    %c3 = arith.constant 3 : index
    %c0_24 = arith.constant 0 : index
    %c0_25 = arith.constant 0 : index
    %37 = vector.load %arg5[%c3, %c0_24, %c0_25] : memref<4x8x2xbf16, #tpu.memory_space<vmem>>, vector<1x8x2xbf16>
    %38 = vector.shape_cast %37 : vector<1x8x2xbf16> to vector<8x2xbf16>
    %39 = vector.extract_strided_slice %22 {offsets = [0, 384], sizes = [2, 128], strides = [1, 1]} : vector<2x512xbf16> to vector<2x128xbf16>
    %cst_26 = arith.constant dense<0.000000e+00> : vector<8x128xf32>
    %40 = tpu.matmul %38, %39, %cst_26 {dimension_numbers = #tpu.dot_dimension_numbers<[1], [0], [0], [1], [0, 0, 1, 1], [], []>} : vector<8x2xbf16>, vector<2x128xbf16>, vector<8x128xf32> -> vector<8x128xf32>
    %41 = arith.addf %36, %40 : vector<8x128xf32>
    %42 = arith.truncf %41 : vector<8x128xf32> to vector<8x128xbf16>
    %c0_27 = arith.constant 0 : index
    %c0_28 = arith.constant 0 : index
    %43 = vector.load %arg7[%c0_27, %c0_28] : memref<128x384xbf16, #tpu.memory_space<vmem>>, vector<128x384xbf16>
    %cst_29 = arith.constant dense<0.000000e+00> : vector<8x384xf32>
    %44 = tpu.matmul %42, %43, %cst_29 {dimension_numbers = #tpu.dot_dimension_numbers<[1], [0], [0], [1], [0, 0, 1, 1], [], []>} : vector<8x128xbf16>, vector<128x384xbf16>, vector<8x384xf32> -> vector<8x384xf32>
    %45 = arith.truncf %44 : vector<8x384xf32> to vector<8x384xbf16>
    %c0_30 = arith.constant 0 : index
    %c0_31 = arith.constant 0 : index
    %c0_32 = arith.constant 0 : index
    %46 = vector.load %arg6[%c0_30, %c0_31, %c0_32] : memref<3x16x8xbf16, #tpu.memory_space<vmem>>, vector<1x16x8xbf16>
    %47 = vector.shape_cast %46 : vector<1x16x8xbf16> to vector<16x8xbf16>
    %48 = vector.extract_strided_slice %45 {offsets = [0, 0], sizes = [8, 128], strides = [1, 1]} : vector<8x384xbf16> to vector<8x128xbf16>
    %cst_33 = arith.constant dense<0.000000e+00> : vector<16x128xf32>
    %49 = tpu.matmul %47, %48, %cst_33 {dimension_numbers = #tpu.dot_dimension_numbers<[1], [0], [0], [1], [0, 0, 1, 1], [], []>} : vector<16x8xbf16>, vector<8x128xbf16>, vector<16x128xf32> -> vector<16x128xf32>
    %c1_34 = arith.constant 1 : index
    %c0_35 = arith.constant 0 : index
    %c0_36 = arith.constant 0 : index
    %50 = vector.load %arg6[%c1_34, %c0_35, %c0_36] : memref<3x16x8xbf16, #tpu.memory_space<vmem>>, vector<1x16x8xbf16>
    %51 = vector.shape_cast %50 : vector<1x16x8xbf16> to vector<16x8xbf16>
    %52 = vector.extract_strided_slice %45 {offsets = [0, 128], sizes = [8, 128], strides = [1, 1]} : vector<8x384xbf16> to vector<8x128xbf16>
    %cst_37 = arith.constant dense<0.000000e+00> : vector<16x128xf32>
    %53 = tpu.matmul %51, %52, %cst_37 {dimension_numbers = #tpu.dot_dimension_numbers<[1], [0], [0], [1], [0, 0, 1, 1], [], []>} : vector<16x8xbf16>, vector<8x128xbf16>, vector<16x128xf32> -> vector<16x128xf32>
    %54 = arith.addf %49, %53 : vector<16x128xf32>
    %c2_38 = arith.constant 2 : index
    %c0_39 = arith.constant 0 : index
    %c0_40 = arith.constant 0 : index
    %55 = vector.load %arg6[%c2_38, %c0_39, %c0_40] : memref<3x16x8xbf16, #tpu.memory_space<vmem>>, vector<1x16x8xbf16>
    %56 = vector.shape_cast %55 : vector<1x16x8xbf16> to vector<16x8xbf16>
    %57 = vector.extract_strided_slice %45 {offsets = [0, 256], sizes = [8, 128], strides = [1, 1]} : vector<8x384xbf16> to vector<8x128xbf16>
    %cst_41 = arith.constant dense<0.000000e+00> : vector<16x128xf32>
    %58 = tpu.matmul %56, %57, %cst_41 {dimension_numbers = #tpu.dot_dimension_numbers<[1], [0], [0], [1], [0, 0, 1, 1], [], []>} : vector<16x8xbf16>, vector<8x128xbf16>, vector<16x128xf32> -> vector<16x128xf32>
    %59 = arith.addf %54, %58 : vector<16x128xf32>
    %c0_42 = arith.constant 0 : index
    %c0_43 = arith.constant 0 : index
    %60 = vector.load %arg8[%c0_42, %c0_43] : memref<1x128xf32, #tpu.memory_space<vmem>>, vector<1x128xf32>
    %61 = vector.broadcast %60 : vector<1x128xf32> to vector<16x128xf32>
    %62 = arith.addf %59, %61 : vector<16x128xf32>
    %cst_44 = arith.constant 0.000000e+00 : f32
    %63 = vector.broadcast %cst_44 : f32 to vector<16x128xf32>
    %64 = arith.cmpf ogt, %62, %63 : vector<16x128xf32>
    %cst_45 = arith.constant 0.00999999977 : f32
    %65 = vector.broadcast %cst_45 : f32 to vector<16x128xf32>
    %66 = arith.mulf %65, %62 : vector<16x128xf32>
    %67 = arith.select %64, %62, %66 : vector<16x128xi1>, vector<16x128xf32>
    %68 = arith.truncf %67 : vector<16x128xf32> to vector<16x128xbf16>
    %c0_46 = arith.constant 0 : index
    %c0_47 = arith.constant 0 : index
    %69 = vector.load %arg10[%c0_46, %c0_47] : memref<128x384xbf16, #tpu.memory_space<vmem>>, vector<128x384xbf16>
    %cst_48 = arith.constant dense<0.000000e+00> : vector<16x384xf32>
    %70 = tpu.matmul %68, %69, %cst_48 {dimension_numbers = #tpu.dot_dimension_numbers<[1], [0], [0], [1], [0, 0, 1, 1], [], []>} : vector<16x128xbf16>, vector<128x384xbf16>, vector<16x384xf32> -> vector<16x384xf32>
    %71 = arith.truncf %70 : vector<16x384xf32> to vector<16x384xbf16>
    %c0_49 = arith.constant 0 : index
    %c0_50 = arith.constant 0 : index
    %c0_51 = arith.constant 0 : index
    %72 = vector.load %arg9[%c0_49, %c0_50, %c0_51] : memref<3x32x16xbf16, #tpu.memory_space<vmem>>, vector<1x32x16xbf16>
    %73 = vector.shape_cast %72 : vector<1x32x16xbf16> to vector<32x16xbf16>
    %74 = vector.extract_strided_slice %71 {offsets = [0, 0], sizes = [16, 128], strides = [1, 1]} : vector<16x384xbf16> to vector<16x128xbf16>
    %cst_52 = arith.constant dense<0.000000e+00> : vector<32x128xf32>
    %75 = tpu.matmul %73, %74, %cst_52 {dimension_numbers = #tpu.dot_dimension_numbers<[1], [0], [0], [1], [0, 0, 1, 1], [], []>} : vector<32x16xbf16>, vector<16x128xbf16>, vector<32x128xf32> -> vector<32x128xf32>
    %c1_53 = arith.constant 1 : index
    %c0_54 = arith.constant 0 : index
    %c0_55 = arith.constant 0 : index
    %76 = vector.load %arg9[%c1_53, %c0_54, %c0_55] : memref<3x32x16xbf16, #tpu.memory_space<vmem>>, vector<1x32x16xbf16>
    %77 = vector.shape_cast %76 : vector<1x32x16xbf16> to vector<32x16xbf16>
    %78 = vector.extract_strided_slice %71 {offsets = [0, 128], sizes = [16, 128], strides = [1, 1]} : vector<16x384xbf16> to vector<16x128xbf16>
    %cst_56 = arith.constant dense<0.000000e+00> : vector<32x128xf32>
    %79 = tpu.matmul %77, %78, %cst_56 {dimension_numbers = #tpu.dot_dimension_numbers<[1], [0], [0], [1], [0, 0, 1, 1], [], []>} : vector<32x16xbf16>, vector<16x128xbf16>, vector<32x128xf32> -> vector<32x128xf32>
    %80 = arith.addf %75, %79 : vector<32x128xf32>
    %c2_57 = arith.constant 2 : index
    %c0_58 = arith.constant 0 : index
    %c0_59 = arith.constant 0 : index
    %81 = vector.load %arg9[%c2_57, %c0_58, %c0_59] : memref<3x32x16xbf16, #tpu.memory_space<vmem>>, vector<1x32x16xbf16>
    %82 = vector.shape_cast %81 : vector<1x32x16xbf16> to vector<32x16xbf16>
    %83 = vector.extract_strided_slice %71 {offsets = [0, 256], sizes = [16, 128], strides = [1, 1]} : vector<16x384xbf16> to vector<16x128xbf16>
    %cst_60 = arith.constant dense<0.000000e+00> : vector<32x128xf32>
    %84 = tpu.matmul %82, %83, %cst_60 {dimension_numbers = #tpu.dot_dimension_numbers<[1], [0], [0], [1], [0, 0, 1, 1], [], []>} : vector<32x16xbf16>, vector<16x128xbf16>, vector<32x128xf32> -> vector<32x128xf32>
    %85 = arith.addf %80, %84 : vector<32x128xf32>
    %c0_61 = arith.constant 0 : index
    %c0_62 = arith.constant 0 : index
    %86 = vector.load %arg11[%c0_61, %c0_62] : memref<1x128xf32, #tpu.memory_space<vmem>>, vector<1x128xf32>
    %87 = vector.broadcast %86 : vector<1x128xf32> to vector<32x128xf32>
    %88 = arith.addf %85, %87 : vector<32x128xf32>
    %cst_63 = arith.constant 0.000000e+00 : f32
    %89 = vector.broadcast %cst_63 : f32 to vector<32x128xf32>
    %90 = arith.cmpf ogt, %88, %89 : vector<32x128xf32>
    %cst_64 = arith.constant 0.00999999977 : f32
    %91 = vector.broadcast %cst_64 : f32 to vector<32x128xf32>
    %92 = arith.mulf %91, %88 : vector<32x128xf32>
    %93 = arith.select %90, %88, %92 : vector<32x128xi1>, vector<32x128xf32>
    %94 = arith.truncf %93 : vector<32x128xf32> to vector<32x128xbf16>
    %c0_65 = arith.constant 0 : index
    %c0_66 = arith.constant 0 : index
    %95 = vector.load %arg13[%c0_65, %c0_66] : memref<128x384xbf16, #tpu.memory_space<vmem>>, vector<128x384xbf16>
    %cst_67 = arith.constant dense<0.000000e+00> : vector<32x384xf32>
    %96 = tpu.matmul %94, %95, %cst_67 {dimension_numbers = #tpu.dot_dimension_numbers<[1], [0], [0], [1], [0, 0, 1, 1], [], []>} : vector<32x128xbf16>, vector<128x384xbf16>, vector<32x384xf32> -> vector<32x384xf32>
    %97 = arith.truncf %96 : vector<32x384xf32> to vector<32x384xbf16>
    %c0_68 = arith.constant 0 : index
    %c0_69 = arith.constant 0 : index
    %c0_70 = arith.constant 0 : index
    %98 = vector.load %arg12[%c0_68, %c0_69, %c0_70] : memref<3x64x32xbf16, #tpu.memory_space<vmem>>, vector<1x64x32xbf16>
    %99 = vector.shape_cast %98 : vector<1x64x32xbf16> to vector<64x32xbf16>
    %100 = vector.extract_strided_slice %97 {offsets = [0, 0], sizes = [32, 128], strides = [1, 1]} : vector<32x384xbf16> to vector<32x128xbf16>
    %cst_71 = arith.constant dense<0.000000e+00> : vector<64x128xf32>
    %101 = tpu.matmul %99, %100, %cst_71 {dimension_numbers = #tpu.dot_dimension_numbers<[1], [0], [0], [1], [0, 0, 1, 1], [], []>} : vector<64x32xbf16>, vector<32x128xbf16>, vector<64x128xf32> -> vector<64x128xf32>
    %c1_72 = arith.constant 1 : index
    %c0_73 = arith.constant 0 : index
    %c0_74 = arith.constant 0 : index
    %102 = vector.load %arg12[%c1_72, %c0_73, %c0_74] : memref<3x64x32xbf16, #tpu.memory_space<vmem>>, vector<1x64x32xbf16>
    %103 = vector.shape_cast %102 : vector<1x64x32xbf16> to vector<64x32xbf16>
    %104 = vector.extract_strided_slice %97 {offsets = [0, 128], sizes = [32, 128], strides = [1, 1]} : vector<32x384xbf16> to vector<32x128xbf16>
    %cst_75 = arith.constant dense<0.000000e+00> : vector<64x128xf32>
    %105 = tpu.matmul %103, %104, %cst_75 {dimension_numbers = #tpu.dot_dimension_numbers<[1], [0], [0], [1], [0, 0, 1, 1], [], []>} : vector<64x32xbf16>, vector<32x128xbf16>, vector<64x128xf32> -> vector<64x128xf32>
    %106 = arith.addf %101, %105 : vector<64x128xf32>
    %c2_76 = arith.constant 2 : index
    %c0_77 = arith.constant 0 : index
    %c0_78 = arith.constant 0 : index
    %107 = vector.load %arg12[%c2_76, %c0_77, %c0_78] : memref<3x64x32xbf16, #tpu.memory_space<vmem>>, vector<1x64x32xbf16>
    %108 = vector.shape_cast %107 : vector<1x64x32xbf16> to vector<64x32xbf16>
    %109 = vector.extract_strided_slice %97 {offsets = [0, 256], sizes = [32, 128], strides = [1, 1]} : vector<32x384xbf16> to vector<32x128xbf16>
    %cst_79 = arith.constant dense<0.000000e+00> : vector<64x128xf32>
    %110 = tpu.matmul %108, %109, %cst_79 {dimension_numbers = #tpu.dot_dimension_numbers<[1], [0], [0], [1], [0, 0, 1, 1], [], []>} : vector<64x32xbf16>, vector<32x128xbf16>, vector<64x128xf32> -> vector<64x128xf32>
    %111 = arith.addf %106, %110 : vector<64x128xf32>
    %c0_80 = arith.constant 0 : index
    %c0_81 = arith.constant 0 : index
    %112 = vector.load %arg14[%c0_80, %c0_81] : memref<1x128xf32, #tpu.memory_space<vmem>>, vector<1x128xf32>
    %113 = vector.broadcast %112 : vector<1x128xf32> to vector<64x128xf32>
    %114 = arith.addf %111, %113 : vector<64x128xf32>
    %cst_82 = arith.constant 0.000000e+00 : f32
    %115 = vector.broadcast %cst_82 : f32 to vector<64x128xf32>
    %116 = arith.subf %115, %114 : vector<64x128xf32>
    %117 = math.exp %116 : vector<64x128xf32>
    %cst_83 = arith.constant 1.000000e+00 : f32
    %118 = vector.broadcast %cst_83 : f32 to vector<64x128xf32>
    %119 = arith.addf %118, %117 : vector<64x128xf32>
    %cst_84 = arith.constant 1.000000e+00 : f32
    %120 = vector.broadcast %cst_84 : f32 to vector<64x128xf32>
    %121 = arith.divf %120, %119 : vector<64x128xf32>
    %c0_85 = arith.constant 0 : index
    %c0_86 = arith.constant 0 : index
    %122 = vector.load %arg15[%c0_85, %c0_86] : memref<64x128xf32, #tpu.memory_space<vmem>>, vector<64x128xf32>
    tpu.vector_store %arg15[%c0_85, %c0_86], %121 {strides = array<i32>} : memref<64x128xf32, #tpu.memory_space<vmem>>, vector<64x128xf32>,
    return
  }
}

</mosaic_0001>

<bundles_post_ra>
// kernel: tpu_custom_call.1
= control target key start
LH: loop header
LB: loop body
LE: loop exit
PB: predicated region body
PF: predicated region fallthrough
CT: control target
= control target key end

     0   :  { %20 = vsyncpa [#allocation3], 0  ;;  %s2692_s0 = inlined_call_operand.vmem [shape: f32[2,8], index: 0, kind: input, shape index: {}]   ;;  %s2693_s1 = inlined_call_operand.vmem [shape: f32[8,32], index: 1, kind: input, shape index: {}]   ;;  %s2694_s2 = inlined_call_operand.vmem [shape: f32[1,32], index: 2, kind: input, shape index: {}]   ;;  %s2695_s3 = inlined_call_operand.vmem [shape: bf16[32,512], index: 3, kind: input, shape index: {}]   ;;  %s2696_s4 = inlined_call_operand.vmem [shape: f32[1,512], index: 4, kind: input, shape index: {}]   ;;  %s2697_s5 = inlined_call_operand.vmem [shape: bf16[4,8,2], index: 5, kind: input, shape index: {}]   ;;  %s2698_s6 = inlined_call_operand.vmem [shape: bf16[3,16,8], index: 6, kind: input, shape index: {}]   ;;  %s2699_s7 = inlined_call_operand.hbm [shape: bf16[128,384], index: 7, kind: input, shape index: {}]   ;;  %s2700_s8 = inlined_call_operand.vmem [shape: f32[1,128], index: 8, kind: input, shape index: {}]   ;;  %s2701_s9 = inlined_call_operand.vmem [shape: bf16[3,32,16], index: 9, kind: input, shape index: {}]   ;;  %s2702_s10 = inlined_call_operand.hbm [shape: bf16[128,384], index: 10, kind: input, shape index: {}]   ;;  %s2703_s11 = inlined_call_operand.vmem [shape: f32[1,128], index: 11, kind: input, shape index: {}]   ;;  %s2704_s12 = inlined_call_operand.vmem [shape: bf16[3,64,32], index: 12, kind: input, shape index: {}]   ;;  %s2705_s13 = inlined_call_operand.hbm [shape: bf16[128,384], index: 13, kind: input, shape index: {}]   ;;  %s2706_s14 = inlined_call_operand.vmem [shape: f32[1,128], index: 14, kind: input, shape index: {}]   ;;  %s2707_s15 = inlined_call_operand.hbm [shape: f32[64,128], index: 15, kind: output, shape index: {}]  }
   0x1   :  { %21 = vsyncpa [#allocation6], 0 }
   0x2   :  { %22 = vsyncpa [#allocation4], 0  ;;  %s58_s20 = sshll.u32 %s2702_s10, 4  ;;  %s2404_s21 = smov [#allocation5]   ;;  %s59_s20 = int_to_ptr.hbm [resolvable:$true] %s58_s20 }
   0x3   :  { %s60_s22 = sshll.u32 %s2404_s21, 4  ;;  %s41_s25 = sshll.u32 %s2699_s7, 4  ;;  %s61_s22 = int_to_ptr.vmem [resolvable:$true] %s60_s22  ;;  %s42_s25 = int_to_ptr.hbm [resolvable:$true] %s41_s25 }
   0x4   :  { %s2405_s26 = smov 192   ;;  %s2406_s27 = smov 12  }
   0x5   :  { %66 = dma.hbm_to_vmem [thread:$0]  %s59_s20, 3072, %s61_s22, [#allocation6], %s2405_s26, %s2405_s26, %s2406_s27  }
   0x6   :  { %s2407_s28 = smov [#allocation2]   ;;  %s75_s17 = sshll.u32 %s2705_s13, 4  ;;  %s76_s17 = int_to_ptr.hbm [resolvable:$true] %s75_s17 }
   0x7   :  { %s43_s29 = sshll.u32 %s2407_s28, 4  ;;  %s2408_s10 = smov [#allocation7]   ;;  %s44_s29 = int_to_ptr.vmem [resolvable:$true] %s43_s29 }
   0x8   :  { %49 = dma.hbm_to_vmem [thread:$0]  %s42_s25, 3072, %s44_s29, [#allocation3], %s2405_s26, %s2405_s26, %s2406_s27  }
   0x9   :  { %s77_s18 = sshll.u32 %s2408_s10, 4  ;;  %s78_s18 = int_to_ptr.vmem [resolvable:$true] %s77_s18 }
   0xa   :  { %83 = dma.hbm_to_vmem [thread:$0]  %s76_s17, 3072, %s78_s18, [#allocation6], %s2405_s26, %s2405_s26, %s2406_s27  }
   0xb   :  { %2398 = dma.done.wait [#allocation3], 3072  }
   0xc   :  { %2399 = vsyncadd [#allocation3], 4294964224 }
   0xd   :  { %2400 = dma.done.wait [#allocation6], 6144  }
   0xe   :  { %2401 = vsyncadd [#allocation6], 4294961152  ;;  %vm105_vm0 = vcmask 64512   ;;  %v100_v0 = vld [vmem:[%s2693_s1] sm:$0xff]  ;;  %v2163_v3 = vld [vmem:[%s2695_s3 + $0x2c] sm:$0xf0] }
   0xf   :  { %v99_v1 = vld [vmem:[%s2692_s0] sm:$0x3]  ;;  %124 = vmatpush.msra.mxu0 %v100_v0  ;;  %v2161_v4 = vld [vmem:[%s2695_s3 + $0x24] sm:$0xf]  ;;  %v1713_v6 = vld [vmem:[%s2695_s3 + $0x30] sm:$0xf0] }
  0x10   :  { %1692 = vmatmul.msk.f32.vlgmr.msra.gmra.mxu0 %vm105_vm0, %v99_v1  ;;  %v1711_v2 = vld [vmem:[%s2695_s3 + $0x20] sm:$0xf]  ;;  %v1719_v7 = vld [vmem:[%s2695_s3 + $0x28] sm:$0xf]  ;;  %v2164_v8 = vld [vmem:[%s2695_s3 + $0x34] sm:$0xf0]  ;;  %v1716_v9 = vor.u32 %v2161_v4, %v1713_v6 }
  0x11   :  { %v1712_v5 = vor.u32 %v2163_v3, %v1711_v2  ;;  %v1720_v10 = vor.u32 %v2164_v8, %v1719_v7  ;;  %v1695_v11 = vld [vmem:[%s2695_s3] sm:$0xf]  ;;  %v2159_v12 = vld [vmem:[%s2695_s3 + $0xc] sm:$0xf0]  ;;  %v2157_v13 = vld [vmem:[%s2695_s3 + $0x4] sm:$0xf] }
  0x12   :  { %214 = vmatpush.bf16.msra.mxu2 %v1716_v9  ;;  %v1696_v14 = vor.u32 %v2159_v12, %v1695_v11  ;;  %v1697_v15 = vld [vmem:[%s2695_s3 + $0x10] sm:$0xf0]  ;;  %v1703_v16 = vld [vmem:[%s2695_s3 + $0x8] sm:$0xf]  ;;  %v2160_v17 = vld [vmem:[%s2695_s3 + $0x14] sm:$0xf0] }
  0x13   :  { %201 = vmatpush.bf16.msrb.mxu0 %v1712_v5  ;;  %227 = vmatpush.bf16.msra.mxu3 %v1720_v10  ;;  %v1700_v18 = vor.u32 %v2157_v13, %v1697_v15  ;;  %v1704_v19 = vor.u32 %v2160_v17, %v1703_v16  ;;  %v2162_v20 = vld [vmem:[%s2695_s3 + $0x2c] sm:$0xf]  ;;  %v1721_v21 = vld [vmem:[%s2695_s3 + $0x38] sm:$0xf0]  ;;  %v2266_v26 = vld [vmem:[%s2694_s2] ss:$0 sm:$0xff] }
  0x14   :  { %v2158_v22 = vld [vmem:[%s2695_s3 + $0xc] sm:$0xf]  ;;  %v1724_v23 = vor.u32 %v2162_v20, %v1721_v21  ;;  %v1705_v24 = vld [vmem:[%s2695_s3 + $0x18] sm:$0xf0]  ;;  %vm191_vm2 = vcmask 261120   ;;  %vm271_vm5 = vcmask 1040384  }
  0x15   :  { %v1708_v25 = vor.u32 %v2158_v22, %v1705_v24  ;;  %v141_v32 = vld [vmem:[%s2696_s4] sm:$0xf]  ;;  %v2186_v42 = vld [vmem:[#allocation2 + $0xac] sm:$0xf]  ;;  %v1824_v45 = vld [vmem:[#allocation2 + $0xb4] sm:$0xf0] }
  0x16   :  { %215 = vmatpush.bf16.msra.mxu2 %v1700_v18  ;;  %v143_v33 = vperm.slane %v141_v32, 0  ;;  %v144_v36 = vperm.slane %v141_v32, 1  ;;  %v145_v44 = vperm.slane %v141_v32, 2  ;;  %v146_v49 = vperm.slane %v141_v32, 3  ;;  %v1822_v50 = vld [vmem:[#allocation2 + $0xa8] sm:$0xf] }
  0x17   :  { %202 = vmatpush.bf16.msrb.mxu0 %v1696_v14  ;;  %228 = vmatpush.bf16.msra.mxu3 %v1704_v19  ;;  %v1827_v51 = vor.u32 %v2186_v42, %v1824_v45  ;;  %v2187_v53 = vld [vmem:[#allocation2 + $0xb0] sm:$0xf0]  ;;  %v1812_v55 = vld [vmem:[#allocation2 + $0x9c] sm:$0xf0]  ;;  %vm267_vm6 = vcmask 15360   ;;  %vm572_vm9 = vcmask 1043456  }
  0x18   :  { %v2183_v54 = vld [vmem:[#allocation2 + $0x94] sm:$0xf]  ;;  %v261_v60 = vld [vmem:[%s2697_s5] sm:$0xf]  ;;  %v1823_v63 = vor.u32 %v2187_v53, %v1822_v50  ;;  %v1810_v0 = vld [vmem:[#allocation2 + $0x90] sm:$0xf] }
  0x19   :  { %v2184_v1 = vld [vmem:[#allocation2 + $0x98] sm:$0xf0]  ;;  %v1815_v2 = vor.u32 %v2183_v54, %v1812_v55  ;;  %v1800_v6 = vld [vmem:[#allocation2 + $0x84] sm:$0xf0]  ;;  %v1729_v8 = vld [vmem:[%s2697_s5 + $0x4] sm:$0xf] }
  0x1a   :  { %v2180_v5 = vld [vmem:[#allocation2 + $0x7c] sm:$0xf]  ;;  %v1830_v9 = vld [vmem:[#allocation2 + $0xb0] sm:$0xf]  ;;  %v1811_v12 = vor.u32 %v2184_v1, %v1810_v0  ;;  %v1798_v16 = vld [vmem:[#allocation2 + $0x78] sm:$0xf] }
  0x1b   :  { %240 = vmatpush.bf16.msra.mxu0 %v1724_v23  ;;  %v2188_v11 = vld [vmem:[#allocation2 + $0xb8] sm:$0xf0]  ;;  %v1803_v13 = vor.u32 %v2180_v5, %v1800_v6  ;;  %v2181_v17 = vld [vmem:[#allocation2 + $0x80] sm:$0xf0]  ;;  %v1788_v21 = vld [vmem:[#allocation2 + $0x6c] sm:$0xf0] }
  0x1c   :  { %v1831_v19 = vor.u32 %v2188_v11, %v1830_v9  ;;  %v2177_v20 = vld [vmem:[#allocation2 + $0x64] sm:$0xf]  ;;  %v1818_v22 = vld [vmem:[#allocation2 + $0x98] sm:$0xf]  ;;  %v2174_v45 = vld [vmem:[#allocation2 + $0x4c] sm:$0xf] }
  0x1d   :  { %v2185_v23 = vld [vmem:[#allocation2 + $0xa0] sm:$0xf0]  ;;  %v2172_v53 = vld [vmem:[#allocation2 + $0x38] sm:$0xf0]  ;;  %v2171_v54 = vld [vmem:[#allocation2 + $0x34] sm:$0xf] }
  0x1e   :  { %v1752_v1 = vld [vmem:[#allocation2 + $0x24] sm:$0xf0]  ;;  %v1738_v6 = vld [vmem:[#allocation2] sm:$0xf]  ;;  %vm889_vm12 = vcmask 130048   ;;  %s2410_s7 = smov 128  }
  0x1f   :  { %241 = vmatpush.bf16.msra.mxu0 %v1708_v25  ;;  %v1746_v11 = vld [vmem:[#allocation2 + $0x8] sm:$0xf]  ;;  %s2411_s19 = smov 8  }
  0x8d   :  { %v126_v27 = vpop.f32.mrf.mxu0 }
  0x8e   :  { %v127_v28 = vadd.f32 %v2266_v26, %v126_v27  ;;  %v1799_v27 = vor.u32 %v2181_v17, %v1798_v16 }
  0x90   :  { %vm129_vm1 = vcmp.gt.f32.partialorder %v127_v28, 0.0  ;;  %v130_v29 = vmul.f32 0.01, %v127_v28 }
  0x92   :  { %v131_v30 = vsel %vm129_vm1, %v127_v28, %v130_v29  ;;  %v1732_v28 = vld [vmem:[%s2697_s5 + $0x8] sm:$0xf]  ;;  %v1786_v29 = vld [vmem:[#allocation2 + $0x60] sm:$0xf] }
  0x93   :  { %v132_v31 = vpack.c.bf16 %v131_v30, %v131_v30  ;;  %v2178_v30 = vld [vmem:[#allocation2 + $0x68] sm:$0xf0] }
  0x95   :  { %1725 = vmatmul.msk.bf16.vlgmr.msrb.gmra.mxu0 %vm191_vm2, %v132_v31  ;;  %1726 = vmatmul.msk.bf16.vlgmr.msra.gmra.mxu2 %vm191_vm2, %v132_v31 }
  0x96   :  { %1727 = vmatmul.msk.bf16.vlgmr.msra.gmra.mxu3 %vm191_vm2, %v132_v31 }
  0xa5   :  { %1728 = vmatmul.msk.bf16.vlgmr.msra.gmra.mxu0 %vm191_vm2, %v132_v31  ;;  %v1791_v31 = vor.u32 %v2177_v20, %v1788_v21 }
 0x112   :  { %v204_v34 = vpop.f32.mrf.mxu0 }
 0x113   :  { %v205_v35 = vadd.f32 %v204_v34, %v143_v33  ;;  %v1819_v33 = vor.u32 %v2185_v23, %v1818_v22  ;;  %v1806_v34 = vld [vmem:[#allocation2 + $0x80] sm:$0xf] }
 0x115   :  { %v251_v38 = vmul.f32 0.01, %v205_v35  ;;  %vm247_vm3 = vcmp.gt.f32.partialorder %v205_v35, 0.0 }
 0x117   :  { %v255_v46 = vsel %vm247_vm3, %v205_v35, %v251_v38  ;;  %v2182_v35 = vld [vmem:[#allocation2 + $0x88] sm:$0xf0] }
 0x118   :  { %v217_v37 = vpop.f32.mrf.mxu2  ;;  %v1734_v38 = vld [vmem:[%s2697_s5 + $0xc] sm:$0xf] }
 0x119   :  { %v218_v39 = vadd.f32 %v217_v37, %v144_v36  ;;  %v230_v40 = vpop.f32.mrf.mxu3  ;;  %v1787_v37 = vor.u32 %v2178_v30, %v1786_v29  ;;  %v2214_v29 = vld [vmem:[#allocation5 + $0xb0] sm:$0xf0]  ;;  %v1925_v30 = vld [vmem:[#allocation5 + $0x90] sm:$0xf] }
 0x11a   :  { %v206_v41 = vpop.f32.mrf.mxu0  ;;  %v231_v52 = vadd.f32 %v230_v40, %v145_v44  ;;  %v1794_v40 = vld [vmem:[#allocation2 + $0x68] sm:$0xf]  ;;  %v2175_v44 = vld [vmem:[#allocation2 + $0x50] sm:$0xf0] }
 0x11b   :  { %vm248_vm4 = vcmp.gt.f32.partialorder %v218_v39, 0.0  ;;  %v252_v43 = vmul.f32 0.01, %v218_v39  ;;  %v2179_v41 = vld [vmem:[#allocation2 + $0x70] sm:$0xf0] }
 0x11c   :  { %v253_v3 = vmul.f32 0.01, %v231_v52  ;;  %vm249_vm7 = vcmp.gt.f32.partialorder %v231_v52, 0.0  ;;  %v1795_v42 = vor.u32 %v2179_v41, %v1794_v40  ;;  %v2191_v41 = vld [vmem:[%s2698_s6 + $0x10] sm:$0xff] }
 0x11d   :  { %v256_v47 = vsel %vm248_vm4, %v218_v39, %v252_v43  ;;  %v1807_v39 = vor.u32 %v2182_v35, %v1806_v34  ;;  %v1774_v43 = vld [vmem:[#allocation2 + $0x48] sm:$0xf] }
 0x11e   :  { %v259_v48 = vpack.c.bf16 %v256_v47, %v255_v46  ;;  %v257_v14 = vsel %vm249_vm7, %v231_v52, %v253_v3  ;;  %v1775_v46 = vor.u32 %v2175_v44, %v1774_v43  ;;  %v1776_v47 = vld [vmem:[#allocation2 + $0x54] sm:$0xf0]  ;;  %v1762_v52 = vld [vmem:[#allocation2 + $0x30] sm:$0xf]  ;;  %v2170_v3 = vld [vmem:[#allocation2 + $0x28] sm:$0xf0] }
 0x11f   :  { %v1779_v50 = vor.u32 %v2174_v45, %v1776_v47  ;;  %v1763_v55 = vor.u32 %v2172_v53, %v1762_v52  ;;  %v2190_v44 = vld [vmem:[%s2698_s6 + $0x8] sm:$0xff]  ;;  %v1901_v52 = vld [vmem:[#allocation5 + $0x60] sm:$0xf] }
 0x120   :  { %v219_v56 = vpop.f32.mrf.mxu2  ;;  %v292_v57 = vsel %vm271_vm5, %v259_v48, 0  ;;  %v265_v58 = vunpack.c.h.b16 %v259_v48  ;;  %v1782_v48 = vld [vmem:[#allocation2 + $0x50] sm:$0xf]  ;;  %v2205_v53 = vld [vmem:[#allocation5 + $0x68] sm:$0xf0] }
 0x121   :  { %v232_v59 = vpop.f32.mrf.mxu3  ;;  %301 = vmatpush.bf16.msrb.mxu2 %v292_v57  ;;  %v1764_v56 = vld [vmem:[#allocation2 + $0x3c] sm:$0xf0]  ;;  %v1770_v57 = vld [vmem:[#allocation2 + $0x38] sm:$0xf] }
 0x122   :  { %v243_v61 = vpop.f32.mrf.mxu0  ;;  %v266_v62 = vpack.c.b16 %v265_v58, %v265_v58  ;;  %v2173_v58 = vld [vmem:[#allocation2 + $0x40] sm:$0xf0]  ;;  %v1767_v59 = vor.u32 %v2171_v54, %v1764_v56  ;;  %v2213_v54 = vld [vmem:[#allocation5 + $0xac] sm:$0xf]  ;;  %v1939_v56 = vld [vmem:[#allocation5 + $0xb4] sm:$0xf0] }
 0x123   :  { %v244_v4 = vadd.f32 %v243_v61, %v146_v49  ;;  %v2176_v49 = vld [vmem:[#allocation2 + $0x58] sm:$0xf0]  ;;  %v1750_v61 = vld [vmem:[#allocation2 + $0x18] sm:$0xf] }
 0x124   :  { %1731 = vmatmul.msk.bf16.vlgmr.msrb.gmra.mxu2 %vm267_vm6, %v261_v60  ;;  %v273_v7 = vsel %vm271_vm5, %v266_v62, 0  ;;  %v1771_v60 = vor.u32 %v2173_v58, %v1770_v57  ;;  %v2169_v62 = vld [vmem:[#allocation2 + $0x20] sm:$0xf0]  ;;  %v1942_v57 = vor.u32 %v2213_v54, %v1939_v56  ;;  %v1889_v58 = vld [vmem:[#allocation5 + $0x48] sm:$0xf] }
 0x125   :  { %528 = vmatpush.bf16.msra.mxu2 %v1827_v51  ;;  %vm250_vm8 = vcmp.gt.f32.partialorder %v244_v4, 0.0  ;;  %v254_v10 = vmul.f32 0.01, %v244_v4  ;;  %282 = vmatpush.bf16.msra.mxu1 %v273_v7  ;;  %v1783_v51 = vor.u32 %v2176_v49, %v1782_v48  ;;  %v1751_v0 = vor.u32 %v2169_v62, %v1750_v61  ;;  %v2166_v7 = vld [vmem:[#allocation2 + $0x8] sm:$0xf0]  ;;  %v2189_v48 = vld [vmem:[%s2698_s6] sm:$0xff] }
 0x126   :  { %v1739_v9 = vor.u32 %v2166_v7, %v1738_v6  ;;  %v1913_v49 = vld [vmem:[#allocation5 + $0x78] sm:$0xf]  ;;  %v2210_v61 = vld [vmem:[#allocation5 + $0x94] sm:$0xf]  ;;  %v1927_v62 = vld [vmem:[#allocation5 + $0x9c] sm:$0xf0] }
 0x127   :  { %v258_v15 = vsel %vm250_vm8, %v244_v4, %v254_v10  ;;  %v1740_v10 = vld [vmem:[#allocation2 + $0xc] sm:$0xf0]  ;;  %v1865_v6 = vld [vmem:[#allocation5 + $0x18] sm:$0xf]  ;;  %v2196_v7 = vld [vmem:[#allocation5 + $0x20] sm:$0xf0] }
 0x128   :  { %1730 = vmatmul.msk.bf16.vlgmr.msra.gmra.mxu1 %vm267_vm6, %v1729_v8  ;;  %v260_v18 = vpack.c.bf16 %v258_v15, %v257_v14  ;;  %v2165_v8 = vld [vmem:[#allocation2 + $0x4] sm:$0xf] }
 0x129   :  { %515 = vmatpush.bf16.msrb.mxu1 %v1823_v63  ;;  %529 = vmatpush.bf16.msra.mxu2 %v1815_v2  ;;  %v2168_v63 = vld [vmem:[#allocation2 + $0x1c] sm:$0xf]  ;;  %v1758_v2 = vld [vmem:[#allocation2 + $0x20] sm:$0xf] }
 0x12a   :  { %v245_v24 = vpop.f32.mrf.mxu0  ;;  %v313_v25 = vsel %vm271_vm5, %v260_v18, 0  ;;  %v332_v26 = vunpack.c.h.b16 %v260_v18  ;;  %v1755_v4 = vor.u32 %v2168_v63, %v1752_v1  ;;  %v1759_v5 = vor.u32 %v2170_v3, %v1758_v2  ;;  %v2199_v1 = vld [vmem:[#allocation5 + $0x38] sm:$0xf0] }
 0x12b   :  { %322 = vmatpush.bf16.msrb.mxu3 %v313_v25  ;;  %v1930_v63 = vor.u32 %v2210_v61, %v1927_v62  ;;  %v2207_v2 = vld [vmem:[#allocation5 + $0x7c] sm:$0xf] }
 0x12c   :  { %v333_v32 = vpack.c.b16 %v332_v26, %v332_v26 }
 0x12d   :  { %516 = vmatpush.bf16.msrb.mxu1 %v1811_v12  ;;  %530 = vmatpush.bf16.msra.mxu2 %v1803_v13  ;;  %v2167_v12 = vld [vmem:[#allocation2 + $0x10] sm:$0xf0]  ;;  %v1743_v13 = vor.u32 %v2165_v8, %v1740_v10  ;;  %v1866_v8 = vor.u32 %v2196_v7, %v1865_v6  ;;  %v1903_v10 = vld [vmem:[#allocation5 + $0x6c] sm:$0xf0] }
 0x12e   :  { %1733 = vmatmul.msk.bf16.vlgmr.msrb.gmra.mxu3 %vm267_vm6, %v1732_v28  ;;  %v338_v36 = vsel %vm271_vm5, %v333_v32, 0  ;;  %v1747_v14 = vor.u32 %v2167_v12, %v1746_v11  ;;  %v1937_v28 = vld [vmem:[#allocation5 + $0xa8] sm:$0xf]  ;;  %v2211_v32 = vld [vmem:[#allocation5 + $0x98] sm:$0xf0] }
 0x12f   :  { %541 = vmatpush.bf16.msra.mxu3 %v1831_v19  ;;  %347 = vmatpush.bf16.msrb.mxu0 %v338_v36  ;;  %v1853_v12 = vld [vmem:[#allocation5] sm:$0xf] }
 0x131   :  { %517 = vmatpush.bf16.msrb.mxu1 %v1799_v27  ;;  %531 = vmatpush.bf16.msra.mxu2 %v1791_v31  ;;  %v1938_v31 = vor.u32 %v2214_v29, %v1937_v28  ;;  %v1867_v28 = vld [vmem:[#allocation5 + $0x24] sm:$0xf0]  ;;  %v1921_v29 = vld [vmem:[#allocation5 + $0x80] sm:$0xf] }
 0x132   :  { %1735 = vmatmul.msk.bf16.vlgmr.msrb.gmra.mxu0 %vm267_vm6, %v1734_v38 }
 0x133   :  { %542 = vmatpush.bf16.msra.mxu3 %v1819_v33  ;;  %v1926_v33 = vor.u32 %v2211_v32, %v1925_v30 }
 0x135   :  { %518 = vmatpush.bf16.msrb.mxu1 %v1787_v37  ;;  %532 = vmatpush.bf16.msra.mxu2 %v1779_v50  ;;  %v2208_v50 = vld [vmem:[#allocation5 + $0x80] sm:$0xf0] }
 0x137   :  { %543 = vmatpush.bf16.msra.mxu3 %v1807_v39 }
 0x139   :  { %519 = vmatpush.bf16.msrb.mxu1 %v1775_v46  ;;  %533 = vmatpush.bf16.msra.mxu2 %v1767_v59  ;;  %v2202_v59 = vld [vmem:[#allocation5 + $0x50] sm:$0xf0] }
 0x13b   :  { %544 = vmatpush.bf16.msra.mxu3 %v1795_v42 }
 0x13d   :  { %520 = vmatpush.bf16.msrb.mxu1 %v1763_v55  ;;  %534 = vmatpush.bf16.msra.mxu2 %v1755_v4  ;;  %v1902_v55 = vor.u32 %v2205_v53, %v1901_v52  ;;  %v1915_v4 = vld [vmem:[#allocation5 + $0x84] sm:$0xf0] }
 0x13f   :  { %545 = vmatpush.bf16.msra.mxu3 %v1783_v51  ;;  %v1914_v51 = vor.u32 %v2208_v50, %v1913_v49  ;;  %v1861_v50 = vld [vmem:[#allocation5 + $0x8] sm:$0xf] }
 0x141   :  { %521 = vmatpush.bf16.msrb.mxu1 %v1751_v0  ;;  %535 = vmatpush.bf16.msra.mxu2 %v1743_v13  ;;  %v1877_v0 = vld [vmem:[#allocation5 + $0x30] sm:$0xf]  ;;  %v2193_v13 = vld [vmem:[#allocation5 + $0x8] sm:$0xf0] }
 0x142   :  { %v1878_v3 = vor.u32 %v2199_v1, %v1877_v0 }
 0x143   :  { %546 = vmatpush.bf16.msra.mxu3 %v1771_v60  ;;  %v1890_v60 = vor.u32 %v2202_v59, %v1889_v58 }
 0x145   :  { %522 = vmatpush.bf16.msrb.mxu1 %v1739_v9  ;;  %818 = vmatpush.bf16.msrb.mxu2 %v1938_v31  ;;  %v2204_v9 = vld [vmem:[#allocation5 + $0x64] sm:$0xf]  ;;  %v2209_v31 = vld [vmem:[#allocation5 + $0x88] sm:$0xf0] }
 0x146   :  { %v1906_v11 = vor.u32 %v2204_v9, %v1903_v10  ;;  %v1922_v32 = vor.u32 %v2209_v31, %v1921_v29 }
 0x147   :  { %547 = vmatpush.bf16.msra.mxu3 %v1759_v5  ;;  %v1918_v5 = vor.u32 %v2207_v2, %v1915_v4 }
 0x149   :  { %819 = vmatpush.bf16.msrb.mxu2 %v1926_v33  ;;  %v2192_v33 = vld [vmem:[#allocation5 + $0x4] sm:$0xf] }
 0x14b   :  { %548 = vmatpush.bf16.msra.mxu3 %v1747_v14  ;;  %v1854_v14 = vor.u32 %v2193_v13, %v1853_v12 }
 0x14d   :  { %820 = vmatpush.bf16.msrb.mxu2 %v1914_v51  ;;  %v2194_v51 = vld [vmem:[#allocation5 + $0x10] sm:$0xf0] }
 0x14e   :  { %v1862_v52 = vor.u32 %v2194_v51, %v1861_v50  ;;  %v2237_v50 = vld [vmem:[#allocation7 + $0x7c] sm:$0xf] }
 0x14f   :  { %832 = vmatpush.bf16.msrb.mxu3 %v1942_v57  ;;  %v2267_v57 = vld [vmem:[%s2700_s8] ss:$0 sm:$0xff] }
 0x151   :  { %821 = vmatpush.bf16.msrb.mxu2 %v1902_v55 }
 0x153   :  { %833 = vmatpush.bf16.msrb.mxu3 %v1930_v63 }
 0x155   :  { %822 = vmatpush.bf16.msrb.mxu2 %v1890_v60 }
 0x157   :  { %834 = vmatpush.bf16.msrb.mxu3 %v1918_v5 }
 0x159   :  { %823 = vmatpush.bf16.msrb.mxu2 %v1878_v3 }
 0x15b   :  { %835 = vmatpush.bf16.msrb.mxu3 %v1906_v11 }
 0x15d   :  { %824 = vmatpush.bf16.msrb.mxu2 %v1866_v8 }
 0x161   :  { %825 = vmatpush.bf16.msrb.mxu2 %v1854_v14 }
 0x1a5   :  { %v284_v15 = vpop.f32.mrf.mxu1 }
 0x1a7   :  { %v303_v16 = vpop.f32.mrf.mxu2 }
 0x1a8   :  { %v304_v18 = vadd.f32 %v303_v16, %v284_v15  ;;  %v2201_v15 = vld [vmem:[#allocation5 + $0x4c] sm:$0xf]  ;;  %v1891_v16 = vld [vmem:[#allocation5 + $0x54] sm:$0xf0] }
 0x1ad   :  { %v286_v17 = vpop.f32.mrf.mxu1 }
 0x1ae   :  { %v1894_v17 = vor.u32 %v2201_v15, %v1891_v16 }
 0x1af   :  { %v305_v19 = vpop.f32.mrf.mxu2  ;;  %v349_v20 = vpop.f32.mrf.mxu0 }
 0x1b0   :  { %v2215_v19 = vld [vmem:[#allocation5 + $0xb8] sm:$0xf0]  ;;  %836 = vmatpush.bf16.msrb.mxu3 %v1894_v17  ;;  %v2216_v17 = vld [vmem:[%s2701_s9] sm:$0xff] }
 0x1b1   :  { %v324_v21 = vpop.f32.mrf.mxu3 }
 0x1b2   :  { %v328_v22 = vadd.f32 %v324_v21, %v304_v18  ;;  %v1945_v18 = vld [vmem:[#allocation5 + $0xb0] sm:$0xf]  ;;  %v2198_v21 = vld [vmem:[#allocation5 + $0x34] sm:$0xf] }
 0x1b4   :  { %v353_v23 = vadd.f32 %v349_v20, %v328_v22  ;;  %v1946_v20 = vor.u32 %v2215_v19, %v1945_v18  ;;  %v1879_v22 = vld [vmem:[#allocation5 + $0x3c] sm:$0xf0]  ;;  %v2218_v18 = vld [vmem:[%s2701_s9 + $0x10] sm:$0xff] }
 0x1b6   :  { %v354_v24 = vpack.c.bf16 %v353_v23, %v353_v23  ;;  %v1933_v23 = vld [vmem:[#allocation5 + $0x98] sm:$0xf] }
 0x1b7   :  { %v351_v25 = vpop.f32.mrf.mxu0 }
 0x1b8   :  { %523 = vmatmul.bf16.vlgmr.msrb.gmra.mxu1 %v354_v24  ;;  %536 = vmatmul.bf16.vlgmr.msra.gmra.mxu2 %v354_v24  ;;  %v2212_v25 = vld [vmem:[#allocation5 + $0xa0] sm:$0xf0] }
 0x1b9   :  { %549 = vmatmul.bf16.vlgmr.msra.gmra.mxu3 %v354_v24  ;;  %v326_v26 = vpop.f32.mrf.mxu3  ;;  %846 = vmatpush.bf16.msra.mxu2 %v1946_v20  ;;  %v1882_v24 = vor.u32 %v2198_v21, %v1879_v22  ;;  %v2071_v20 = vld [vmem:[#allocation7 + $0xa8] sm:$0xf]  ;;  %v2244_v21 = vld [vmem:[#allocation7 + $0xb0] sm:$0xf0]  ;;  %v2243_v22 = vld [vmem:[#allocation7 + $0xac] sm:$0xf] }
 0x1ba   :  { %v1934_v26 = vor.u32 %v2212_v25, %v1933_v23  ;;  %v2072_v23 = vor.u32 %v2244_v21, %v2071_v20  ;;  %v2079_v25 = vld [vmem:[#allocation7 + $0xb0] sm:$0xf]  ;;  %v1999_v20 = vld [vmem:[#allocation7 + $0x18] sm:$0xf]  ;;  %v2226_v21 = vld [vmem:[#allocation7 + $0x20] sm:$0xf0] }
 0x1bb   :  { %837 = vmatpush.bf16.msrb.mxu3 %v1882_v24  ;;  %v2073_v24 = vld [vmem:[#allocation7 + $0xb4] sm:$0xf0] }
 0x1bd   :  { %847 = vmatpush.bf16.msra.mxu2 %v1934_v26  ;;  %v2245_v26 = vld [vmem:[#allocation7 + $0xb8] sm:$0xf0] }
 0x1c1   :  { %848 = vmatpush.bf16.msra.mxu2 %v1922_v32 }
 0x235   :  { %v524_v27 = vpop.f32.mrf.mxu1 }
 0x23b   :  { %v537_v34 = vpop.f32.mrf.mxu2 }
 0x23c   :  { %v554_v35 = vpack.c.bf16 %v537_v34, %v524_v27  ;;  %v550_v36 = vpop.f32.mrf.mxu3  ;;  %v2195_v27 = vld [vmem:[#allocation5 + $0x1c] sm:$0xf]  ;;  %v1855_v34 = vld [vmem:[#allocation5 + $0xc] sm:$0xf0] }
 0x23d   :  { %v555_v37 = vpack.c.bf16 %v550_v36, %v550_v36  ;;  %v526_v38 = vpop.f32.mrf.mxu1  ;;  %v1870_v30 = vor.u32 %v2195_v27, %v1867_v28  ;;  %v2076_v27 = vor.u32 %v2243_v22, %v2073_v24  ;;  %v2080_v28 = vor.u32 %v2245_v26, %v2079_v25  ;;  %v2225_v22 = vld [vmem:[#allocation7 + $0x1c] sm:$0xf]  ;;  %v2001_v24 = vld [vmem:[#allocation7 + $0x24] sm:$0xf0]  ;;  %v2007_v25 = vld [vmem:[#allocation7 + $0x20] sm:$0xf] }
 0x23e   :  { %v567_v39 = vunpack.c.h.b16 %v554_v35  ;;  %v599_v45 = vsel %vm572_vm9, %v554_v35, 0  ;;  %v1909_v35 = vld [vmem:[#allocation5 + $0x68] sm:$0xf]  ;;  %v2206_v38 = vld [vmem:[#allocation5 + $0x70] sm:$0xf0] }
 0x23f   :  { %v627_v40 = vsel %vm572_vm9, %v555_v37, 0  ;;  %838 = vmatpush.bf16.msrb.mxu3 %v1870_v30  ;;  %v1858_v37 = vor.u32 %v2192_v33, %v1855_v34  ;;  %v2227_v26 = vld [vmem:[#allocation7 + $0x28] sm:$0xf0] }
 0x240   :  { %v568_v42 = vpack.c.b16 %v567_v39, %v567_v39  ;;  %636 = vmatpush.bf16.msra.mxu1 %v627_v40  ;;  %v1910_v39 = vor.u32 %v2206_v38, %v1909_v35  ;;  %v1897_v40 = vld [vmem:[#allocation5 + $0x50] sm:$0xf]  ;;  %v2220_v35 = vld [vmem:[%s2701_s9 + $0x20] sm:$0xff]  ;;  %v2221_v38 = vld [vmem:[%s2701_s9 + $0x28] sm:$0xff] }
 0x242   :  { %v574_v43 = vsel %vm572_vm9, %v568_v42, 0  ;;  %849 = vmatpush.bf16.msra.mxu2 %v1910_v39  ;;  %v2059_v39 = vld [vmem:[#allocation7 + $0x90] sm:$0xf] }
 0x243   :  { %v539_v46 = vpop.f32.mrf.mxu2  ;;  %583 = vmatpush.bf16.msra.mxu0 %v574_v43  ;;  %1850 = vmatmul.msk.bf16.vlgmr.msra.gmra.mxu1 %vm105_vm0, %v2191_v41  ;;  %v2203_v41 = vld [vmem:[#allocation5 + $0x58] sm:$0xf0]  ;;  %v1885_v43 = vld [vmem:[#allocation5 + $0x38] sm:$0xf] }
 0x244   :  { %v552_v47 = vpop.f32.mrf.mxu3  ;;  %839 = vmatpush.bf16.msrb.mxu3 %v1858_v37  ;;  %v1898_v42 = vor.u32 %v2203_v41, %v1897_v40  ;;  %v2219_v37 = vld [vmem:[%s2701_s9 + $0x18] sm:$0xff]  ;;  %v2240_v41 = vld [vmem:[#allocation7 + $0x94] sm:$0xf] }
 0x245   :  { %v1873_v47 = vld [vmem:[#allocation5 + $0x20] sm:$0xf]  ;;  %v2241_v40 = vld [vmem:[#allocation7 + $0x98] sm:$0xf0] }
 0x246   :  { %1838 = vmatmul.msk.bf16.vlgmr.msra.gmra.mxu0 %vm105_vm0, %v2190_v44  ;;  %v2200_v44 = vld [vmem:[#allocation5 + $0x40] sm:$0xf0]  ;;  %850 = vmatpush.bf16.msra.mxu2 %v1898_v42  ;;  %v2060_v42 = vor.u32 %v2241_v40, %v2059_v39 }
 0x247   :  { %608 = vmatpush.bf16.msrb.mxu0 %v599_v45  ;;  %v1886_v45 = vor.u32 %v2200_v44, %v1885_v43  ;;  %v2061_v43 = vld [vmem:[#allocation7 + $0x9c] sm:$0xf0]  ;;  %v2067_v44 = vld [vmem:[#allocation7 + $0x98] sm:$0xf] }
 0x24a   :  { %851 = vmatpush.bf16.msra.mxu2 %v1886_v45  ;;  %v2242_v45 = vld [vmem:[#allocation7 + $0xa0] sm:$0xf0] }
 0x24b   :  { %1205 = vmatpush.bf16.msra.mxu0 %v2076_v27  ;;  %v2004_v27 = vor.u32 %v2225_v22, %v2001_v24 }
 0x256   :  { %1843 = vmatmul.msk.bf16.vlgmr.msrb.gmra.mxu0 %vm105_vm0, %v2189_v48  ;;  %v2197_v48 = vld [vmem:[#allocation5 + $0x28] sm:$0xf0] }
 0x257   :  { %v1874_v49 = vor.u32 %v2197_v48, %v1873_v47  ;;  %v2068_v47 = vor.u32 %v2242_v45, %v2067_v44  ;;  %v2047_v48 = vld [vmem:[#allocation7 + $0x78] sm:$0xf]  ;;  %v2268_v45 = vld [vmem:[%s2703_s11] ss:$0 sm:$0xff]  ;;  %s1678_s11 = sshll.u32 %s2707_s15, 4  ;;  %s1679_s11 = int_to_ptr.hbm [resolvable:$true] %s1678_s11 }
 0x259   :  { %852 = vmatpush.bf16.msra.mxu2 %v1874_v49  ;;  %v2238_v49 = vld [vmem:[#allocation7 + $0x80] sm:$0xf0] }
 0x25a   :  { %v2048_v51 = vor.u32 %v2238_v49, %v2047_v48 }
 0x25d   :  { %853 = vmatpush.bf16.msra.mxu2 %v1862_v52  ;;  %v2049_v52 = vld [vmem:[#allocation7 + $0x84] sm:$0xf0] }
 0x2c0   :  { %v638_v53 = vpop.f32.mrf.mxu1 }
 0x2c3   :  { %v585_v36 = vpop.f32.mrf.mxu0 }
 0x2c8   :  { %v640_v61 = vpop.f32.mrf.mxu1 }
 0x2cb   :  { %v587_v46 = vpop.f32.mrf.mxu0 }
 0x2d3   :  { %v610_v54 = vpop.f32.mrf.mxu0 }
 0x2d4   :  { %v611_v55 = vadd.f32 %v610_v54, %v585_v36  ;;  %v2217_v36 = vld [vmem:[%s2701_s9 + $0x8] sm:$0xff] }
 0x2d5   :  { %v2239_v54 = vld [vmem:[#allocation7 + $0x88] sm:$0xf0] }
 0x2d6   :  { %v643_v56 = vadd.f32 %v638_v53, %v611_v55  ;;  %v2055_v53 = vld [vmem:[#allocation7 + $0x80] sm:$0xf]  ;;  %v2052_v55 = vor.u32 %v2237_v50, %v2049_v52 }
 0x2d8   :  { %v649_v59 = vadd.f32 %v2267_v57, %v643_v56  ;;  %v2056_v56 = vor.u32 %v2239_v54, %v2055_v53 }
 0x2da   :  { %v653_v63 = vmul.f32 0.01, %v649_v59  ;;  %vm651_vm10 = vcmp.gt.f32.partialorder %v649_v59, 0.0 }
 0x2db   :  { %v612_v58 = vpop.f32.mrf.mxu0 }
 0x2dc   :  { %v613_v60 = vadd.f32 %v612_v58, %v587_v46  ;;  %v655_v2 = vsel %vm651_vm10, %v649_v59, %v653_v63  ;;  %v2064_v46 = vor.u32 %v2240_v41, %v2061_v43  ;;  %v2235_v58 = vld [vmem:[#allocation7 + $0x68] sm:$0xf0]  ;;  %v2234_v59 = vld [vmem:[#allocation7 + $0x64] sm:$0xf]  ;;  %v2236_v63 = vld [vmem:[#allocation7 + $0x70] sm:$0xf0] }
 0x2de   :  { %v644_v62 = vadd.f32 %v640_v61, %v613_v60  ;;  %1206 = vmatpush.bf16.msra.mxu0 %v2064_v46  ;;  %v2037_v61 = vld [vmem:[#allocation7 + $0x6c] sm:$0xf0] }
 0x2e0   :  { %v650_v0 = vadd.f32 %v2267_v57, %v644_v62  ;;  %v2035_v57 = vld [vmem:[#allocation7 + $0x60] sm:$0xf]  ;;  %v2043_v62 = vld [vmem:[#allocation7 + $0x68] sm:$0xf] }
 0x2e1   :  { %v2036_v60 = vor.u32 %v2235_v58, %v2035_v57 }
 0x2e2   :  { %vm652_vm11 = vcmp.gt.f32.partialorder %v650_v0, 0.0  ;;  %v654_v1 = vmul.f32 0.01, %v650_v0  ;;  %1207 = vmatpush.bf16.msra.mxu0 %v2052_v55 }
 0x2e4   :  { %v656_v3 = vsel %vm652_vm11, %v650_v0, %v654_v1  ;;  %v2040_v0 = vor.u32 %v2234_v59, %v2037_v61  ;;  %v2044_v1 = vor.u32 %v2236_v63, %v2043_v62 }
 0x2e5   :  { %v657_v4 = vpack.c.bf16 %v656_v3, %v655_v2  ;;  %v2023_v2 = vld [vmem:[#allocation7 + $0x48] sm:$0xf]  ;;  %v2232_v3 = vld [vmem:[#allocation7 + $0x50] sm:$0xf0] }
 0x2e6   :  { %1208 = vmatpush.bf16.msra.mxu0 %v2040_v0 }
 0x2e7   :  { %826 = vmatmul.bf16.vlgmr.msrb.gmra.mxu2 %v657_v4  ;;  %840 = vmatmul.bf16.vlgmr.msrb.gmra.mxu3 %v657_v4 }
 0x2f7   :  { %854 = vmatmul.bf16.vlgmr.msra.gmra.mxu2 %v657_v4  ;;  %v2024_v4 = vor.u32 %v2232_v3, %v2023_v2 }
 0x36a   :  { %v827_v5 = vpop.f32.mrf.mxu2  ;;  %v841_v6 = vpop.f32.mrf.mxu3 }
 0x36b   :  { %v860_v7 = vpack.c.bf16 %v841_v6, %v827_v5  ;;  %v2231_v5 = vld [vmem:[#allocation7 + $0x4c] sm:$0xf]  ;;  %v2025_v6 = vld [vmem:[#allocation7 + $0x54] sm:$0xf0] }
 0x36d   :  { %v885_v11 = vunpack.c.h.b16 %v860_v7  ;;  %v925_v12 = vunpack.c.l.b16 %v860_v7  ;;  %v2031_v7 = vld [vmem:[#allocation7 + $0x50] sm:$0xf] }
 0x372   :  { %v829_v8 = vpop.f32.mrf.mxu2  ;;  %v843_v9 = vpop.f32.mrf.mxu3 }
 0x373   :  { %v862_v10 = vpack.c.bf16 %v843_v9, %v829_v8  ;;  %v2028_v8 = vor.u32 %v2231_v5, %v2025_v6  ;;  %v2233_v9 = vld [vmem:[#allocation7 + $0x58] sm:$0xf0] }
 0x375   :  { %v886_v13 = vunpack.c.h.b16 %v862_v10  ;;  %v926_v14 = vunpack.c.l.b16 %v862_v10  ;;  %v2032_v10 = vor.u32 %v2233_v9, %v2031_v7  ;;  %1209 = vmatpush.bf16.msra.mxu0 %v2028_v8 }
 0x377   :  { %v887_v15 = vpack.c.b16 %v886_v13, %v885_v11  ;;  %v927_v16 = vpack.c.b16 %v926_v14, %v925_v12  ;;  %v2011_v11 = vld [vmem:[#allocation7 + $0x30] sm:$0xf]  ;;  %v2229_v12 = vld [vmem:[#allocation7 + $0x38] sm:$0xf0]  ;;  %v2228_v13 = vld [vmem:[#allocation7 + $0x34] sm:$0xf] }
 0x378   :  { %v2012_v14 = vor.u32 %v2229_v12, %v2011_v11 }
 0x379   :  { %903 = vmatpush.bf16.msrb.mxu1 %v887_v15  ;;  %942 = vmatpush.bf16.msrb.mxu2 %v927_v16  ;;  %v2013_v15 = vld [vmem:[#allocation7 + $0x3c] sm:$0xf0]  ;;  %v2019_v16 = vld [vmem:[#allocation7 + $0x38] sm:$0xf] }
 0x37a   :  { %v855_v19 = vpop.f32.mrf.mxu2 }
 0x37b   :  { %v861_v29 = vpack.c.bf16 %v855_v19, %v855_v19 }
 0x37c   :  { %1969 = vmatmul.msk.bf16.vlgmr.msrb.gmra.mxu2 %vm889_vm12, %v2216_v17  ;;  %1959 = vmatmul.msk.bf16.vlgmr.msrb.gmra.mxu1 %vm889_vm12, %v2218_v18  ;;  %v2230_v17 = vld [vmem:[#allocation7 + $0x40] sm:$0xf0]  ;;  %v2016_v18 = vor.u32 %v2228_v13, %v2013_v15 }
 0x37d   :  { %1186 = vmatpush.bf16.msra.mxu1 %v2072_v23  ;;  %1224 = vmatpush.bf16.msra.mxu2 %v2080_v28  ;;  %v971_v32 = vunpack.c.l.b16 %v861_v29  ;;  %v2020_v19 = vor.u32 %v2230_v17, %v2019_v16  ;;  %v2000_v23 = vor.u32 %v2226_v21, %v1999_v20  ;;  %v2008_v28 = vor.u32 %v2227_v26, %v2007_v25  ;;  %v1987_v29 = vld [vmem:[#allocation7] sm:$0xf] }
 0x37e   :  { %1210 = vmatpush.bf16.msra.mxu0 %v2016_v18 }
 0x381   :  { %1187 = vmatpush.bf16.msra.mxu1 %v2060_v42  ;;  %1225 = vmatpush.bf16.msra.mxu2 %v2068_v47 }
 0x382   :  { %v857_v30 = vpop.f32.mrf.mxu2  ;;  %1211 = vmatpush.bf16.msra.mxu0 %v2004_v27 }
 0x383   :  { %v863_v31 = vpack.c.bf16 %v857_v30, %v857_v30  ;;  %v2223_v30 = vld [vmem:[#allocation7 + $0x8] sm:$0xf0] }
 0x385   :  { %v972_v33 = vunpack.c.l.b16 %v863_v31  ;;  %1188 = vmatpush.bf16.msra.mxu1 %v2048_v51  ;;  %1226 = vmatpush.bf16.msra.mxu2 %v2056_v56  ;;  %v2222_v31 = vld [vmem:[#allocation7 + $0x4] sm:$0xf] }
 0x387   :  { %v973_v34 = vpack.c.b16 %v972_v33, %v971_v32  ;;  %v1988_v32 = vor.u32 %v2223_v30, %v1987_v29  ;;  %v1989_v33 = vld [vmem:[#allocation7 + $0xc] sm:$0xf0] }
 0x389   :  { %988 = vmatpush.bf16.msra.mxu3 %v973_v34  ;;  %1189 = vmatpush.bf16.msra.mxu1 %v2036_v60  ;;  %v1995_v34 = vld [vmem:[#allocation7 + $0x8] sm:$0xf] }
 0x38a   :  { %1227 = vmatpush.bf16.msra.mxu2 %v2044_v1 }
 0x38c   :  { %1983 = vmatmul.msk.bf16.vlgmr.msra.gmra.mxu3 %vm889_vm12, %v2220_v35  ;;  %1970 = vmatmul.msk.bf16.gmra.mxu2 %vm889_vm12, %v2217_v36  ;;  %v2224_v35 = vld [vmem:[#allocation7 + $0x10] sm:$0xf0]  ;;  %v1992_v36 = vor.u32 %v2222_v31, %v1989_v33 }
 0x38d   :  { %1960 = vmatmul.msk.bf16.gmra.mxu1 %vm889_vm12, %v2219_v37  ;;  %v1996_v37 = vor.u32 %v2224_v35, %v1995_v34 }
 0x38e   :  { %1190 = vmatpush.bf16.msra.mxu1 %v2024_v4  ;;  %1228 = vmatpush.bf16.msra.mxu2 %v2032_v10 }
 0x38f   :  { %1212 = vmatpush.bf16.msra.mxu0 %v1992_v36 }
 0x392   :  { %1191 = vmatpush.bf16.msra.mxu1 %v2012_v14  ;;  %1229 = vmatpush.bf16.msra.mxu2 %v2020_v19 }
 0x396   :  { %1192 = vmatpush.bf16.msra.mxu1 %v2000_v23  ;;  %1230 = vmatpush.bf16.msra.mxu2 %v2008_v28 }
 0x39a   :  { %1193 = vmatpush.bf16.msra.mxu1 %v1988_v32  ;;  %1231 = vmatpush.bf16.msra.mxu2 %v1996_v37 }
 0x39c   :  { %1984 = vmatmul.msk.bf16.gmra.mxu3 %vm889_vm12, %v2221_v38 }
 0x3f9   :  { %v905_v38 = vpop.f32.mrf.mxu1 }
 0x3ff   :  { %v944_v39 = vpop.f32.mrf.mxu2 }
 0x400   :  { %v945_v40 = vadd.f32 %v944_v39, %v905_v38 }
 0x401   :  { %v907_v41 = vpop.f32.mrf.mxu1 }
 0x407   :  { %v946_v42 = vpop.f32.mrf.mxu2 }
 0x408   :  { %v947_v46 = vadd.f32 %v946_v42, %v907_v41 }
 0x40a   :  { %v910_v50 = vpop.f32.mrf.mxu1 }
 0x40f   :  { %v990_v43 = vpop.f32.mrf.mxu3  ;;  %v949_v51 = vpop.f32.mrf.mxu2 }
 0x410   :  { %v1000_v44 = vadd.f32 %v990_v43, %v945_v40  ;;  %v950_v56 = vadd.f32 %v949_v51, %v910_v50  ;;  %v2250_v43 = vld [vmem:[%s2704_s12 + $0x20] sm:$0xff]  ;;  %v2251_v50 = vld [vmem:[%s2704_s12 + $0x28] sm:$0xff] }
 0x411   :  { %v2247_v51 = vld [vmem:[%s2704_s12 + $0x8] sm:$0xff] }
 0x412   :  { %v1008_v47 = vadd.f32 %v2268_v45, %v1000_v44  ;;  %v912_v61 = vpop.f32.mrf.mxu1  ;;  %v2246_v44 = vld [vmem:[%s2704_s12] sm:$0xff] }
 0x414   :  { %v1016_v52 = vmul.f32 0.01, %v1008_v47  ;;  %vm1012_vm13 = vcmp.gt.f32.partialorder %v1008_v47, 0.0 }
 0x416   :  { %v1020_v55 = vsel %vm1012_vm13, %v1008_v47, %v1016_v52  ;;  %v2255_v52 = vld [vmem:[%s2704_s12 + $0x48] sm:$0xff] }
 0x417   :  { %v992_v48 = vpop.f32.mrf.mxu3  ;;  %v951_v62 = vpop.f32.mrf.mxu2 }
 0x418   :  { %v1001_v49 = vadd.f32 %v992_v48, %v947_v46  ;;  %v952_v63 = vadd.f32 %v951_v62, %v912_v61 }
 0x41a   :  { %v1009_v53 = vadd.f32 %v2268_v45, %v1001_v49  ;;  %v2254_v49 = vld [vmem:[%s2704_s12 + $0x40] sm:$0xff] }
 0x41c   :  { %vm1013_vm14 = vcmp.gt.f32.partialorder %v1009_v53, 0.0  ;;  %v1017_v54 = vmul.f32 0.01, %v1009_v53 }
 0x41e   :  { %v1021_v57 = vsel %vm1013_vm14, %v1009_v53, %v1017_v54  ;;  %v2252_v53 = vld [vmem:[%s2704_s12 + $0x30] sm:$0xff] }
 0x41f   :  { %v995_v58 = vpop.f32.mrf.mxu3  ;;  %v1024_v59 = vpack.c.bf16 %v1021_v57, %v1020_v55  ;;  %v2248_v54 = vld [vmem:[%s2704_s12 + $0x10] sm:$0xff]  ;;  %v2249_v57 = vld [vmem:[%s2704_s12 + $0x18] sm:$0xff] }
 0x420   :  { %v1002_v60 = vadd.f32 %v995_v58, %v950_v56  ;;  %v2256_v55 = vld [vmem:[%s2704_s12 + $0x50] sm:$0xff]  ;;  %v2253_v56 = vld [vmem:[%s2704_s12 + $0x38] sm:$0xff] }
 0x421   :  { %1194 = vmatmul.bf16.vlgmr.msra.gmra.mxu1 %v1024_v59  ;;  %1213 = vmatmul.bf16.vlgmr.msra.gmra.mxu0 %v1024_v59  ;;  %v2257_v58 = vld [vmem:[%s2704_s12 + $0x58] sm:$0xff]  ;;  %s2409_s12 = smov [#allocation8]  }
 0x422   :  { %1232 = vmatmul.bf16.vlgmr.msra.gmra.mxu2 %v1024_v59  ;;  %v1010_v0 = vadd.f32 %v2268_v45, %v1002_v60 }
 0x424   :  { %v1018_v3 = vmul.f32 0.01, %v1010_v0  ;;  %vm1014_vm15 = vcmp.gt.f32.partialorder %v1010_v0, 0.0 }
 0x426   :  { %v1022_v6 = vsel %vm1014_vm15, %v1010_v0, %v1018_v3 }
 0x427   :  { %v997_v1 = vpop.f32.mrf.mxu3 }
 0x428   :  { %v1003_v2 = vadd.f32 %v997_v1, %v952_v63  ;;  %v2679_v63 = vld [vmem:[%s2706_s14] ss:$0 sm:$0xff]  ;;  %s1676_s14 = sshll.u32 %s2409_s12, 4  ;;  %s1677_s14 = int_to_ptr.vmem [resolvable:$true] %s1676_s14 }
 0x42a   :  { %v1011_v4 = vadd.f32 %v2268_v45, %v1003_v2 }
 0x42c   :  { %vm1015_vm0 = vcmp.gt.f32.partialorder %v1011_v4, 0.0  ;;  %v1019_v5 = vmul.f32 0.01, %v1011_v4 }
 0x42e   :  { %v1023_v7 = vsel %vm1015_vm0, %v1011_v4, %v1019_v5 }
 0x42f   :  { %v1025_v8 = vpack.c.bf16 %v1023_v7, %v1022_v6 }
 0x431   :  { %1199 = vmatmul.bf16.gmra.mxu1 %v1025_v8  ;;  %1218 = vmatmul.bf16.gmra.mxu0 %v1025_v8 }
 0x432   :  { %1237 = vmatmul.bf16.gmra.mxu2 %v1025_v8 }
 0x49e   :  { %v1195_v9 = vpop.f32.mrf.mxu1  ;;  %v1214_v10 = vpop.f32.mrf.mxu0 }
 0x49f   :  { %v1243_v23 = vpack.c.bf16 %v1214_v10, %v1195_v9 }
 0x4a1   :  { %v1292_v33 = vunpack.c.h.b16 %v1243_v23  ;;  %v1361_v34 = vunpack.c.l.b16 %v1243_v23 }
 0x4a5   :  { %v1233_v11 = vpop.f32.mrf.mxu2 }
 0x4a6   :  { %v1197_v12 = vpop.f32.mrf.mxu1  ;;  %v1216_v13 = vpop.f32.mrf.mxu0  ;;  %v1244_v40 = vpack.c.bf16 %v1233_v11, %v1233_v11 }
 0x4a7   :  { %v1245_v21 = vpack.c.bf16 %v1216_v13, %v1197_v12 }
 0x4a8   :  { %v1443_v47 = vunpack.c.l.b16 %v1244_v40 }
 0x4a9   :  { %v1293_v28 = vunpack.c.h.b16 %v1245_v21  ;;  %v1362_v29 = vunpack.c.l.b16 %v1245_v21 }
 0x4ab   :  { %v1296_v38 = vpack.c.b16 %v1293_v28, %v1292_v33  ;;  %v1365_v39 = vpack.c.b16 %v1362_v29, %v1361_v34 }
 0x4ad   :  { %v1235_v14 = vpop.f32.mrf.mxu2 }
 0x4ae   :  { %v1200_v15 = vpop.f32.mrf.mxu1  ;;  %v1219_v16 = vpop.f32.mrf.mxu0  ;;  %v1246_v36 = vpack.c.bf16 %v1235_v14, %v1235_v14 }
 0x4af   :  { %v1247_v17 = vpack.c.bf16 %v1219_v16, %v1200_v15 }
 0x4b0   :  { %v1444_v45 = vunpack.c.l.b16 %v1246_v36 }
 0x4b1   :  { %v1294_v24 = vunpack.c.h.b16 %v1247_v17  ;;  %v1363_v25 = vunpack.c.l.b16 %v1247_v17 }
 0x4b2   :  { %v1447_v48 = vpack.c.b16 %v1444_v45, %v1443_v47 }
 0x4b5   :  { %v1238_v18 = vpop.f32.mrf.mxu2 }
 0x4b6   :  { %v1202_v19 = vpop.f32.mrf.mxu1  ;;  %v1221_v20 = vpop.f32.mrf.mxu0  ;;  %v1248_v32 = vpack.c.bf16 %v1238_v18, %v1238_v18 }
 0x4b7   :  { %v1249_v22 = vpack.c.bf16 %v1221_v20, %v1202_v19 }
 0x4b8   :  { %v1445_v41 = vunpack.c.l.b16 %v1248_v32 }
 0x4b9   :  { %v1295_v26 = vunpack.c.h.b16 %v1249_v22  ;;  %v1364_v27 = vunpack.c.l.b16 %v1249_v22 }
 0x4bb   :  { %v1297_v30 = vpack.c.b16 %v1295_v26, %v1294_v24  ;;  %v1366_v31 = vpack.c.b16 %v1364_v27, %v1363_v25 }
 0x4bd   :  { %v1240_v35 = vpop.f32.mrf.mxu2  ;;  %1318 = vmatpush.bf16.msrb.mxu3 %v1297_v30  ;;  %1387 = vmatpush.bf16.msrb.mxu1 %v1366_v31 }
 0x4be   :  { %v1250_v37 = vpack.c.bf16 %v1240_v35, %v1240_v35 }
 0x4c0   :  { %v1446_v42 = vunpack.c.l.b16 %v1250_v37 }
 0x4c1   :  { %1319 = vmatpush.bf16.msrb.mxu3 %v1296_v38  ;;  %1388 = vmatpush.bf16.msrb.mxu1 %v1365_v39 }
 0x4c2   :  { %v1448_v46 = vpack.c.b16 %v1446_v42, %v1445_v41 }
 0x4c4   :  { %1469 = vmatpush.bf16.msrb.mxu0 %v1448_v46  ;;  %2105 = vmatmul.msk.bf16.vlgmr.msrb.gmra.mxu3 %vm191_vm2, %v2250_v43 }
 0x4c5   :  { %2125 = vmatmul.msk.bf16.vlgmr.msrb.gmra.mxu1 %vm191_vm2, %v2246_v44 }
 0x4c8   :  { %1470 = vmatpush.bf16.msrb.mxu0 %v1447_v48 }
 0x4cb   :  { %2153 = vmatmul.msk.bf16.vlgmr.msrb.gmra.mxu0 %vm191_vm2, %v2254_v49 }
 0x4d4   :  { %2106 = vmatmul.msk.bf16.gmra.mxu3 %vm191_vm2, %v2251_v50 }
 0x4d5   :  { %2126 = vmatmul.msk.bf16.gmra.mxu1 %vm191_vm2, %v2247_v51 }
 0x4db   :  { %2154 = vmatmul.msk.bf16.gmra.mxu0 %vm191_vm2, %v2255_v52 }
 0x4e4   :  { %2107 = vmatmul.msk.bf16.gmra.mxu3 %vm191_vm2, %v2252_v53 }
 0x4e5   :  { %2127 = vmatmul.msk.bf16.gmra.mxu1 %vm191_vm2, %v2248_v54 }
 0x4eb   :  { %2155 = vmatmul.msk.bf16.gmra.mxu0 %vm191_vm2, %v2256_v55 }
 0x4f4   :  { %2108 = vmatmul.msk.bf16.gmra.mxu3 %vm191_vm2, %v2253_v56 }
 0x4f5   :  { %2128 = vmatmul.msk.bf16.gmra.mxu1 %vm191_vm2, %v2249_v57 }
 0x4fb   :  { %2156 = vmatmul.msk.bf16.gmra.mxu0 %vm191_vm2, %v2257_v58 }
 0x542   :  { %v1390_v59 = vpop.f32.mrf.mxu1 }
 0x547   :  { %v1321_v60 = vpop.f32.mrf.mxu3 }
 0x548   :  { %v1391_v61 = vadd.f32 %v1390_v59, %v1321_v60  ;;  %v1472_v62 = vpop.f32.mrf.mxu0 }
 0x54a   :  { %v1492_v0 = vadd.f32 %v1472_v62, %v1391_v61  ;;  %v1392_v1 = vpop.f32.mrf.mxu1 }
 0x54c   :  { %v1504_v2 = vadd.f32 %v2679_v63, %v1492_v0 }
 0x54e   :  { %v1512_v3 = vsub.f32 0.0, %v1504_v2 }
 0x54f   :  { %v1323_v4 = vpop.f32.mrf.mxu3 }
 0x550   :  { %v1520_v5 = vmul.f32 1.442695, %v1512_v3  ;;  %v1393_v6 = vadd.f32 %v1392_v1, %v1323_v4  ;;  %v1474_v7 = vpop.f32.mrf.mxu0 }
 0x552   :  { %2270 = vpow2.f32 %v1520_v5  ;;  %v1493_v8 = vadd.f32 %v1474_v7, %v1393_v6  ;;  %v1395_v9 = vpop.f32.mrf.mxu1 }
 0x554   :  { %v1505_v10 = vadd.f32 %v2679_v63, %v1493_v8 }
 0x556   :  { %v1513_v11 = vsub.f32 0.0, %v1505_v10 }
 0x557   :  { %v1326_v12 = vpop.f32.mrf.mxu3 }
 0x558   :  { %v2271_v13 = vpop.eup %2270  ;;  %v1522_v14 = vmul.f32 1.442695, %v1513_v11  ;;  %v1396_v15 = vadd.f32 %v1395_v9, %v1326_v12  ;;  %v1477_v16 = vpop.f32.mrf.mxu0 }
 0x559   :  { %v1536_v17 = vadd.f32 1.0, %v2271_v13 }
 0x55a   :  { %2272 = vpow2.f32 %v1522_v14  ;;  %v1494_v18 = vadd.f32 %v1477_v16, %v1396_v15  ;;  %v1397_v19 = vpop.f32.mrf.mxu1 }
 0x55b   :  { %2274 = vrcp.f32 %v1536_v17  ;;  %v1555_v34 = vand.u32 2147483648, %v1536_v17  ;;  %v1553_v36 = vand.u32 2147483647, %v1536_v17  ;;  %vm1549_vm2 = vweird.f32 %v1536_v17 }
 0x55c   :  { %v1506_v20 = vadd.f32 %v2679_v63, %v1494_v18 }
 0x55d   :  { %v1556_v45 = vor.u32 1.1754944e-38, %v1555_v34  ;;  %vm1554_vm4 = vcmp.eq.f32.partialorder %v1553_v36, 8.507059e+37 }
 0x55e   :  { %v1514_v21 = vsub.f32 0.0, %v1506_v20 }
 0x55f   :  { %v1328_v22 = vpop.f32.mrf.mxu3 }
 0x560   :  { %v2273_v23 = vpop.eup %2272  ;;  %v1524_v24 = vmul.f32 1.442695, %v1514_v21  ;;  %v1398_v25 = vadd.f32 %v1397_v19, %v1328_v22  ;;  %v1479_v26 = vpop.f32.mrf.mxu0 }
 0x561   :  { %v2275_v27 = vpop.eup %2274  ;;  %v1537_v28 = vadd.f32 1.0, %v2273_v23 }
 0x562   :  { %v1545_v29 = vmul.f32 %v2275_v27, %v1536_v17  ;;  %2276 = vpow2.f32 %v1524_v24  ;;  %v1495_v30 = vadd.f32 %v1479_v26, %v1398_v25  ;;  %v1400_v31 = vpop.f32.mrf.mxu1  ;;  %vm1550_vm1 = vweird.f32 %v2275_v27 }
 0x563   :  { %2278 = vrcp.f32 %v1537_v28  ;;  %vm1551_vm3 = vmor %vm1549_vm2, %vm1550_vm1  ;;  %v1570_v53 = vand.u32 2147483648, %v1537_v28  ;;  %v1568_v55 = vand.u32 2147483647, %v1537_v28  ;;  %vm1564_vm6 = vweird.f32 %v1537_v28 }
 0x564   :  { %v1546_v32 = vsub.f32 1.0, %v1545_v29  ;;  %v1507_v33 = vadd.f32 %v2679_v63, %v1495_v30 }
 0x565   :  { %v1571_v1 = vor.u32 1.1754944e-38, %v1570_v53  ;;  %vm1569_vm8 = vcmp.eq.f32.partialorder %v1568_v55, 8.507059e+37 }
 0x566   :  { %v1547_v35 = vmul.f32 %v2275_v27, %v1546_v32  ;;  %v1515_v37 = vsub.f32 0.0, %v1507_v33 }
 0x567   :  { %v1331_v38 = vpop.f32.mrf.mxu3 }
 0x568   :  { %v2277_v39 = vpop.eup %2276  ;;  %v1548_v40 = vadd.f32 %v2275_v27, %v1547_v35  ;;  %v1526_v41 = vmul.f32 1.442695, %v1515_v37  ;;  %v1401_v42 = vadd.f32 %v1400_v31, %v1331_v38  ;;  %v1482_v43 = vpop.f32.mrf.mxu0 }
 0x569   :  { %v2279_v44 = vpop.eup %2278  ;;  %v1538_v46 = vadd.f32 1.0, %v2277_v39 }
 0x56a   :  { %v1552_v47 = vsel %vm1551_vm3, %v2275_v27, %v1548_v40  ;;  %v1560_v48 = vmul.f32 %v2279_v44, %v1537_v28  ;;  %2280 = vpow2.f32 %v1526_v41  ;;  %v1402_v50 = vpop.f32.mrf.mxu1  ;;  %v1496_v52 = vadd.f32 %v1482_v43, %v1401_v42 }
 0x56b   :  { %v1557_v49 = vsel %vm1554_vm4, %v1556_v45, %v1552_v47  ;;  %2282 = vrcp.f32 %v1538_v46  ;;  %vm1565_vm5 = vweird.f32 %v2279_v44  ;;  %v1585_v9 = vand.u32 2147483648, %v1538_v46 }
 0x56c   :  { %1664 = vst [vmem:[#allocation8] sm:$0xff] %v1557_v49  ;;  %v1561_v51 = vsub.f32 1.0, %v1560_v48  ;;  %v1508_v56 = vadd.f32 %v2679_v63, %v1496_v52  ;;  %vm1566_vm7 = vmor %vm1564_vm6, %vm1565_vm5  ;;  %v1583_v12 = vand.u32 2147483647, %v1538_v46  ;;  %vm1579_vm10 = vweird.f32 %v1538_v46 }
 0x56d   :  { %v1586_v20 = vor.u32 1.1754944e-38, %v1585_v9 }
 0x56e   :  { %v1562_v54 = vmul.f32 %v2279_v44, %v1561_v51  ;;  %v1516_v60 = vsub.f32 0.0, %v1508_v56  ;;  %vm1584_vm12 = vcmp.eq.f32.partialorder %v1583_v12, 8.507059e+37 }
 0x56f   :  { %v1333_v57 = vpop.f32.mrf.mxu3 }
 0x570   :  { %v2281_v58 = vpop.eup %2280  ;;  %v1563_v59 = vadd.f32 %v2279_v44, %v1562_v54  ;;  %v1403_v61 = vadd.f32 %v1402_v50, %v1333_v57  ;;  %v1484_v62 = vpop.f32.mrf.mxu0  ;;  %v1528_v5 = vmul.f32 1.442695, %v1516_v60 }
 0x571   :  { %v2283_v0 = vpop.eup %2282  ;;  %v1539_v2 = vadd.f32 1.0, %v2281_v58 }
 0x572   :  { %v1567_v3 = vsel %vm1566_vm7, %v2279_v44, %v1563_v59  ;;  %v1575_v4 = vmul.f32 %v2283_v0, %v1538_v46  ;;  %v1497_v8 = vadd.f32 %v1484_v62, %v1403_v61  ;;  %v1405_v10 = vpop.f32.mrf.mxu1  ;;  %vm1580_vm9 = vweird.f32 %v2283_v0 }
 0x573   :  { %v1572_v6 = vsel %vm1569_vm8, %v1571_v1, %v1567_v3  ;;  %2284 = vrcp.f32 %v1539_v2  ;;  %vm1581_vm11 = vmor %vm1579_vm10, %vm1580_vm9  ;;  %v1600_v29 = vand.u32 2147483648, %v1539_v2  ;;  %v1598_v31 = vand.u32 2147483647, %v1539_v2 }
 0x574   :  { %1665 = vst [vmem:[#allocation8 + $0x8] sm:$0xff] %v1572_v6  ;;  %v1576_v7 = vsub.f32 1.0, %v1575_v4  ;;  %2286 = vpow2.f32 %v1528_v5  ;;  %v1509_v13 = vadd.f32 %v2679_v63, %v1497_v8  ;;  %vm1594_vm14 = vweird.f32 %v1539_v2 }
 0x575   :  { %v1601_v38 = vor.u32 1.1754944e-38, %v1600_v29  ;;  %vm1599_vm0 = vcmp.eq.f32.partialorder %v1598_v31, 8.507059e+37 }
 0x576   :  { %v1577_v11 = vmul.f32 %v2283_v0, %v1576_v7  ;;  %v1517_v16 = vsub.f32 0.0, %v1509_v13 }
 0x577   :  { %v1336_v14 = vpop.f32.mrf.mxu3 }
 0x578   :  { %v1578_v15 = vadd.f32 %v2283_v0, %v1577_v11  ;;  %v1406_v17 = vadd.f32 %v1405_v10, %v1336_v14  ;;  %v1487_v18 = vpop.f32.mrf.mxu0  ;;  %v1530_v24 = vmul.f32 1.442695, %v1517_v16 }
 0x579   :  { %v2285_v19 = vpop.eup %2284 }
 0x57a   :  { %v2287_v21 = vpop.eup %2286  ;;  %v1582_v22 = vsel %vm1581_vm11, %v2283_v0, %v1578_v15  ;;  %v1590_v23 = vmul.f32 %v2285_v19, %v1539_v2  ;;  %v1498_v27 = vadd.f32 %v1487_v18, %v1406_v17  ;;  %2288 = vpow2.f32 %v1530_v24  ;;  %v1407_v34 = vpop.f32.mrf.mxu1 }
 0x57b   :  { %v1587_v25 = vsel %vm1584_vm12, %v1586_v20, %v1582_v22  ;;  %v1540_v26 = vadd.f32 1.0, %v2287_v21  ;;  %vm1595_vm13 = vweird.f32 %v2285_v19 }
 0x57c   :  { %1666 = vst [vmem:[#allocation8 + $0x10] sm:$0xff] %v1587_v25  ;;  %v1591_v28 = vsub.f32 1.0, %v1590_v23  ;;  %v1510_v32 = vadd.f32 %v2679_v63, %v1498_v27  ;;  %vm1596_vm15 = vmor %vm1594_vm14, %vm1595_vm13 }
 0x57d   :  { %2290 = vrcp.f32 %v1540_v26  ;;  %v1615_v51 = vand.u32 2147483648, %v1540_v26  ;;  %v1613_v53 = vand.u32 2147483647, %v1540_v26  ;;  %vm1609_vm2 = vweird.f32 %v1540_v26 }
 0x57e   :  { %v1592_v30 = vmul.f32 %v2285_v19, %v1591_v28  ;;  %v1518_v36 = vsub.f32 0.0, %v1510_v32 }
 0x57f   :  { %v1338_v33 = vpop.f32.mrf.mxu3  ;;  %v1616_v58 = vor.u32 1.1754944e-38, %v1615_v51  ;;  %vm1614_vm4 = vcmp.eq.f32.partialorder %v1613_v53, 8.507059e+37 }
 0x580   :  { %v1593_v35 = vadd.f32 %v2285_v19, %v1592_v30  ;;  %v1408_v37 = vadd.f32 %v1407_v34, %v1338_v33  ;;  %v1489_v39 = vpop.f32.mrf.mxu0  ;;  %v2289_v40 = vpop.eup %2288  ;;  %v1532_v42 = vmul.f32 1.442695, %v1518_v36 }
 0x581   :  { %v1541_v46 = vadd.f32 1.0, %v2289_v40 }
 0x582   :  { %v1597_v41 = vsel %vm1596_vm15, %v2285_v19, %v1593_v35  ;;  %v1499_v43 = vadd.f32 %v1489_v39, %v1408_v37  ;;  %2292 = vpow2.f32 %v1532_v42 }
 0x583   :  { %v2291_v44 = vpop.eup %2290  ;;  %v1602_v45 = vsel %vm1599_vm0, %v1601_v38, %v1597_v41  ;;  %2294 = vrcp.f32 %v1541_v46  ;;  %v1630_v0 = vand.u32 2147483648, %v1541_v46  ;;  %v1628_v3 = vand.u32 2147483647, %v1541_v46 }
 0x584   :  { %1667 = vst [vmem:[#allocation8 + $0x18] sm:$0xff] %v1602_v45  ;;  %v1605_v47 = vmul.f32 %v2291_v44, %v1540_v26  ;;  %v1511_v48 = vadd.f32 %v2679_v63, %v1499_v43  ;;  %vm1610_vm1 = vweird.f32 %v2291_v44  ;;  %vm1624_vm6 = vweird.f32 %v1541_v46 }
 0x585   :  { %vm1611_vm3 = vmor %vm1609_vm2, %vm1610_vm1  ;;  %v1631_v7 = vor.u32 1.1754944e-38, %v1630_v0  ;;  %vm1629_vm8 = vcmp.eq.f32.partialorder %v1628_v3, 8.507059e+37 }
 0x586   :  { %v1606_v49 = vsub.f32 1.0, %v1605_v47  ;;  %v1519_v50 = vsub.f32 0.0, %v1511_v48 }
 0x588   :  { %v1607_v52 = vmul.f32 %v2291_v44, %v1606_v49  ;;  %v1534_v54 = vmul.f32 1.442695, %v1519_v50  ;;  %v2293_v55 = vpop.eup %2292 }
 0x589   :  { %v2295_v57 = vpop.eup %2294  ;;  %v1542_v59 = vadd.f32 1.0, %v2293_v55 }
 0x58a   :  { %v1608_v56 = vadd.f32 %v2291_v44, %v1607_v52  ;;  %2296 = vpow2.f32 %v1534_v54  ;;  %v1620_v61 = vmul.f32 %v2295_v57, %v1541_v46  ;;  %vm1625_vm5 = vweird.f32 %v2295_v57 }
 0x58b   :  { %2298 = vrcp.f32 %v1542_v59  ;;  %vm1626_vm7 = vmor %vm1624_vm6, %vm1625_vm5  ;;  %v1645_v12 = vand.u32 2147483648, %v1542_v59  ;;  %v1643_v14 = vand.u32 2147483647, %v1542_v59  ;;  %vm1639_vm10 = vweird.f32 %v1542_v59 }
 0x58c   :  { %v1612_v60 = vsel %vm1611_vm3, %v2291_v44, %v1608_v56  ;;  %v1621_v62 = vsub.f32 1.0, %v1620_v61 }
 0x58d   :  { %v1617_v63 = vsel %vm1614_vm4, %v1616_v58, %v1612_v60  ;;  %v1646_v18 = vor.u32 1.1754944e-38, %v1645_v12  ;;  %vm1644_vm12 = vcmp.eq.f32.partialorder %v1643_v14, 8.507059e+37 }
 0x58e   :  { %1668 = vst [vmem:[#allocation8 + $0x20] sm:$0xff] %v1617_v63  ;;  %v1622_v2 = vmul.f32 %v2295_v57, %v1621_v62 }
 0x590   :  { %v2297_v1 = vpop.eup %2296  ;;  %v1623_v5 = vadd.f32 %v2295_v57, %v1622_v2 }
 0x591   :  { %v1543_v4 = vadd.f32 1.0, %v2297_v1  ;;  %v2299_v6 = vpop.eup %2298 }
 0x592   :  { %v1627_v8 = vsel %vm1626_vm7, %v2295_v57, %v1623_v5  ;;  %v1635_v9 = vmul.f32 %v2299_v6, %v1542_v59  ;;  %vm1640_vm9 = vweird.f32 %v2299_v6 }
 0x593   :  { %2300 = vrcp.f32 %v1543_v4  ;;  %v1632_v10 = vsel %vm1629_vm8, %v1631_v7, %v1627_v8  ;;  %vm1641_vm11 = vmor %vm1639_vm10, %vm1640_vm9  ;;  %v1660_v22 = vand.u32 2147483648, %v1543_v4  ;;  %v1658_v24 = vand.u32 2147483647, %v1543_v4 }
 0x594   :  { %1669 = vst [vmem:[#allocation8 + $0x28] sm:$0xff] %v1632_v10  ;;  %v1636_v11 = vsub.f32 1.0, %v1635_v9  ;;  %vm1654_vm14 = vweird.f32 %v1543_v4 }
 0x595   :  { %v1661_v26 = vor.u32 1.1754944e-38, %v1660_v22  ;;  %vm1659_vm0 = vcmp.eq.f32.partialorder %v1658_v24, 8.507059e+37 }
 0x596   :  { %v1637_v13 = vmul.f32 %v2299_v6, %v1636_v11 }
 0x598   :  { %v1638_v16 = vadd.f32 %v2299_v6, %v1637_v13 }
 0x599   :  { %v2301_v15 = vpop.eup %2300 }
 0x59a   :  { %v1650_v17 = vmul.f32 %v2301_v15, %v1543_v4  ;;  %v1642_v19 = vsel %vm1641_vm11, %v2299_v6, %v1638_v16  ;;  %vm1655_vm13 = vweird.f32 %v2301_v15 }
 0x59b   :  { %v1647_v21 = vsel %vm1644_vm12, %v1646_v18, %v1642_v19  ;;  %vm1656_vm15 = vmor %vm1654_vm14, %vm1655_vm13 }
 0x59c   :  { %v1651_v20 = vsub.f32 1.0, %v1650_v17  ;;  %1670 = vst [vmem:[#allocation8 + $0x30] sm:$0xff] %v1647_v21 }
 0x59e   :  { %v1652_v23 = vmul.f32 %v2301_v15, %v1651_v20 }
 0x5a0   :  { %v1653_v25 = vadd.f32 %v2301_v15, %v1652_v23 }
 0x5a2   :  { %v1657_v27 = vsel %vm1656_vm15, %v2301_v15, %v1653_v25 }
 0x5a3   :  { %v1662_v28 = vsel %vm1659_vm0, %v1661_v26, %v1657_v27 }
 0x5a4   :  { %1671 = vst [vmem:[#allocation8 + $0x38] sm:$0xff] %v1662_v28 }
 0x5a5   :  { %1684 = dma.vmem_to_hbm [thread:$0]  %s1677_s14, 1024, %s1679_s11, [#allocation4], %s2410_s7, %s2410_s7, %s2411_s19  }
 0x5a6   :  { %2402 = dma.done.wait [#allocation4], 1024  }
 0x5a7   :  { %2403 = vsyncadd [#allocation4], 4294966272 }
 0x5a8   :  { %1689 = vsyncpa [#allocation3], 1 }
 0x5a9   :  { %1690 = vsyncpa [#allocation6], 1 }
 0x5aa   :  { %1691 = vsyncpa [#allocation4], 1 }

</bundles_post_ra>
